<compile_context>
chip_gen: v6e
topology: v6e:2x2x1
jax: 0.10.0
libtpu: 0.0.40
codegen_flags: <defaults>
</compile_context>

<pallas_src>
import functools

import jax
import jax.numpy as jnp
from jax.experimental import pallas as pl
from jax.experimental.pallas import tpu as pltpu


# ----------------------------------------------------------------------------
# Offline weight prep: fold AdaptiveAvgPool2d((2,2)) + Flatten into W_ih_l0.
# ----------------------------------------------------------------------------
def fold_pool_into_weight(w_ih_l0_t, C, H, W):
    """w_ih_l0_t: (4*C, 4*hidden), row index = c*4 + 2*i + j (PyTorch Flatten order
    of the pooled (N, C, 2, 2) maps).  Returns W_eff (C*H*W, 4*hidden) such that
    feats.reshape(N, C*H*W) @ W_eff == flatten(adaptive_avg_pool2x2(feats)) @ w_ih_l0_t.
    Assumes H, W even (exact AdaptiveAvgPool2d((2,2)) behaviour in that case)."""
    assert H % 2 == 0 and W % 2 == 0, "even H/W assumed (matches 2x2 adaptive pool bins)"
    quad = (2 * (jnp.arange(H) >= H // 2).astype(jnp.int32)[:, None]
            + (jnp.arange(W) >= W // 2).astype(jnp.int32)[None, :])        # (H, W)
    rows = (jnp.arange(C)[:, None, None] * 4 + quad[None, :, :]).reshape(-1)
    scale = 1.0 / ((H // 2) * (W // 2))
    return w_ih_l0_t[rows] * scale                                          # (C*H*W, 4*hidden)


# ----------------------------------------------------------------------------
# Fused kernel: pool-folded input projection -> 2-layer LSTM -> Linear.
# ----------------------------------------------------------------------------
def fused_kernel(x_ref, weff_ref, w1h_ref, b1_ref, w2_ref, b2_ref,
                 fcw_ref, fcb_ref, out_ref, *, seq_len, batch, hidden):
    T, B, Hh = seq_len, batch, hidden

    # (1) Hoisted (time-invariant) layer-1 input projection for ALL time steps:
    #     one (T*B, C*H*W) @ (C*H*W, 4H) MXU pass, bf16 operands, f32 accumulation.
    xproj = (jnp.dot(x_ref[...], weff_ref[...],
                     preferred_element_type=jnp.float32)
             + b1_ref[...])                                  # (T*B, 4H) f32, time-major

    w1h = w1h_ref[...]                                       # (Hh, 4Hh)   bf16
    w2 = w2_ref[...]                                         # (2Hh, 4Hh)  bf16 = [W_ih_l1; W_hh_l1]
    b2 = b2_ref[...]                                         # (1, 4Hh)    f32

    def gate_act(g):                                         # PyTorch gate order (i, f, g, o)
        i = jax.nn.sigmoid(g[:, 0 * Hh:1 * Hh])
        f = jax.nn.sigmoid(g[:, 1 * Hh:2 * Hh])
        c = jnp.tanh(g[:, 2 * Hh:3 * Hh])
        o = jax.nn.sigmoid(g[:, 3 * Hh:4 * Hh])
        return i, f, c, o

    h1 = jnp.zeros((B, Hh), jnp.float32)
    c1 = jnp.zeros((B, Hh), jnp.float32)
    h2 = jnp.zeros((B, Hh), jnp.float32)
    c2 = jnp.zeros((B, Hh), jnp.float32)

    # (2) Fully unrolled recurrence (T static & tiny): only the h-matmuls remain
    #     per step.  Gate/elementwise math stays f32; only matmul operands are bf16.
    for t in range(T):
        g1 = xproj[t * B:(t + 1) * B, :] + jnp.dot(
            h1.astype(jnp.bfloat16), w1h, preferred_element_type=jnp.float32)
        i1, f1, gg1, o1 = gate_act(g1)
        c1 = f1 * c1 + i1 * gg1
        h1 = o1 * jnp.tanh(c1)

        # Layer 2: single fused matmul  [x2_t, h2_{t-1}] @ [W_ih_l1; W_hh_l1].
        h12 = jnp.concatenate([h1, h2], axis=-1).astype(jnp.bfloat16)   # (B, 2Hh)
        g2 = jnp.dot(h12, w2, preferred_element_type=jnp.float32) + b2
        i2, f2, gg2, o2 = gate_act(g2)
        c2 = f2 * c2 + i2 * gg2
        h2 = o2 * jnp.tanh(c2)

    # (3) Final Linear fused into the epilogue: logits = h_n[-1] @ fc_w.T + fc_b.
    out_ref[...] = (jnp.dot(h2.astype(jnp.bfloat16), fcw_ref[...],
                            preferred_element_type=jnp.float32)
                    + fcb_ref[...])


# ----------------------------------------------------------------------------
# Wrapper reproducing ClassificationModel.forward (minus the timm backbone).
# ----------------------------------------------------------------------------
def classification_forward(x, w_eff, w1h, b1, w2, b2, fc_w, fc_b,
                           *, hidden, num_classes):
    B, F, C, H, W = x.shape
    # TODO(synk): resnet101 backbone skipped; `x` stands in for the x3 feature maps.
    # One cheap time-major transpose of the raw input; pool+flatten are already
    # folded into w_eff so no intermediate tensors exist between here and logits.
    feats_tm = (jnp.transpose(x, (1, 0, 2, 3, 4))
                .reshape(F * B, C * H * W)
                .astype(jnp.bfloat16))                       # rows: t*B + b

    kernel = functools.partial(fused_kernel, seq_len=F, batch=B, hidden=hidden)
    return pl.pallas_call(
        kernel,
        out_shape=jax.ShapeDtypeStruct((B, num_classes), jnp.float32),
        in_specs=[pl.BlockSpec(memory_space=pltpu.MemorySpace.VMEM)] * 8,
        out_specs=pl.BlockSpec(memory_space=pltpu.MemorySpace.VMEM),
    )(feats_tm, w_eff, w1h, b1, w2, b2, fc_w, fc_b)


if __name__ == "__main__":
    # Small shapes consistent with the module: x3 feature maps (B, F, C, H, W);
    # C*H*W = 2048 matches the real LSTM input width; pooled dim D_in = 4*C.
    B, F, C, H, W = 2, 6, 32, 8, 8
    hidden, num_classes = 32, 10
    D_in = 4 * C

    key = jax.random.PRNGKey(0)
    ks = jax.random.split(key, 12)
    scale = 0.1

    x = jax.random.normal(ks[0], (B, F, C, H, W), jnp.float32)

    # Parameters in PyTorch shapes.
    w_ih_l0 = jax.random.normal(ks[1], (4 * hidden, D_in), jnp.float32) * scale
    w_hh_l0 = jax.random.normal(ks[2], (4 * hidden, hidden), jnp.float32) * scale
    b_ih_l0 = jax.random.normal(ks[3], (4 * hidden,), jnp.float32) * scale
    b_hh_l0 = jax.random.normal(ks[4], (4 * hidden,), jnp.float32) * scale
    w_ih_l1 = jax.random.normal(ks[5], (4 * hidden, hidden), jnp.float32) * scale
    w_hh_l1 = jax.random.normal(ks[6], (4 * hidden, hidden), jnp.float32) * scale
    b_ih_l1 = jax.random.normal(ks[7], (4 * hidden,), jnp.float32) * scale
    b_hh_l1 = jax.random.normal(ks[8], (4 * hidden,), jnp.float32) * scale
    fc_weight = jax.random.normal(ks[9], (num_classes, hidden), jnp.float32) * scale
    fc_bias = jax.random.normal(ks[10], (num_classes,), jnp.float32) * scale

    # One-time (load-time) weight prep: fold pool+flatten into the layer-1 input
    # weight, pre-transpose everything to (in, out), pre-sum b_ih + b_hh, stack
    # layer-2's [W_ih; W_hh], cast matmul weights to bf16 (f32 acc in-kernel).
    w_eff = fold_pool_into_weight(w_ih_l0.T, C, H, W).astype(jnp.bfloat16)   # (C*H*W, 4H)
    w1h = w_hh_l0.T.astype(jnp.bfloat16)                                      # (H, 4H)
    b1 = (b_ih_l0 + b_hh_l0)[None, :]                                         # (1, 4H) f32
    w2 = jnp.concatenate([w_ih_l1.T, w_hh_l1.T], axis=0).astype(jnp.bfloat16) # (2H, 4H)
    b2 = (b_ih_l1 + b_hh_l1)[None, :]                                         # (1, 4H) f32
    fc_w = fc_weight.T.astype(jnp.bfloat16)                                   # (H, classes)
    fc_b = fc_bias[None, :]                                                   # (1, classes)

    fwd = jax.jit(functools.partial(
        classification_forward, hidden=hidden, num_classes=num_classes))

    out = fwd(x, w_eff, w1h, b1, w2, b2, fc_w, fc_b)
    out = jax.block_until_ready(out)
    assert out.shape == (B, num_classes) and out.dtype == jnp.float32
    print("KERNEL_OK")
</pallas_src>

<mosaic_0001>
module attributes {stable_mosaic.version = 11 : i64} {
  func.func @fused_kernel(%arg0: memref<12x2048xbf16, #tpu.memory_space<vmem>>, %arg1: memref<2048x128xbf16, #tpu.memory_space<vmem>>, %arg2: memref<32x128xbf16, #tpu.memory_space<vmem>>, %arg3: memref<1x128xf32, #tpu.memory_space<vmem>>, %arg4: memref<64x128xbf16, #tpu.memory_space<vmem>>, %arg5: memref<1x128xf32, #tpu.memory_space<vmem>>, %arg6: memref<32x10xbf16, #tpu.memory_space<vmem>>, %arg7: memref<1x10xf32, #tpu.memory_space<vmem>>, %arg8: memref<2x10xf32, #tpu.memory_space<vmem>>) attributes {dimension_semantics = [], scalar_prefetch = 0 : i64, scratch_operands = 0 : i64, tpu.core_type = #tpu.core_type<tc>} {
    %c0 = arith.constant 0 : index
    %c0_0 = arith.constant 0 : index
    %0 = vector.load %arg0[%c0, %c0_0] : memref<12x2048xbf16, #tpu.memory_space<vmem>>, vector<12x2048xbf16>
    %c0_1 = arith.constant 0 : index
    %c0_2 = arith.constant 0 : index
    %1 = vector.load %arg1[%c0_1, %c0_2] : memref<2048x128xbf16, #tpu.memory_space<vmem>>, vector<2048x128xbf16>
    %cst = arith.constant dense<0.000000e+00> : vector<12x128xf32>
    %2 = tpu.matmul %0, %1, %cst {dimension_numbers = #tpu.dot_dimension_numbers<[1], [0], [0], [1], [0, 0, 1, 1], [], []>} : vector<12x2048xbf16>, vector<2048x128xbf16>, vector<12x128xf32> -> vector<12x128xf32>
    %c0_3 = arith.constant 0 : index
    %c0_4 = arith.constant 0 : index
    %3 = vector.load %arg3[%c0_3, %c0_4] : memref<1x128xf32, #tpu.memory_space<vmem>>, vector<1x128xf32>
    %4 = vector.broadcast %3 : vector<1x128xf32> to vector<12x128xf32>
    %5 = arith.addf %2, %4 : vector<12x128xf32>
    %c0_5 = arith.constant 0 : index
    %c0_6 = arith.constant 0 : index
    %6 = vector.load %arg2[%c0_5, %c0_6] : memref<32x128xbf16, #tpu.memory_space<vmem>>, vector<32x128xbf16>
    %c0_7 = arith.constant 0 : index
    %c0_8 = arith.constant 0 : index
    %7 = vector.load %arg4[%c0_7, %c0_8] : memref<64x128xbf16, #tpu.memory_space<vmem>>, vector<64x128xbf16>
    %c0_9 = arith.constant 0 : index
    %c0_10 = arith.constant 0 : index
    %8 = vector.load %arg5[%c0_9, %c0_10] : memref<1x128xf32, #tpu.memory_space<vmem>>, vector<1x128xf32>
    %cst_11 = arith.constant 0.000000e+00 : f32
    %9 = vector.broadcast %cst_11 : f32 to vector<2x32xf32>
    %cst_12 = arith.constant 0.000000e+00 : f32
    %10 = vector.broadcast %cst_12 : f32 to vector<2x32xf32>
    %cst_13 = arith.constant 0.000000e+00 : f32
    %11 = vector.broadcast %cst_13 : f32 to vector<2x32xf32>
    %cst_14 = arith.constant 0.000000e+00 : f32
    %12 = vector.broadcast %cst_14 : f32 to vector<2x32xf32>
    %13 = vector.extract_strided_slice %5 {offsets = [0, 0], sizes = [2, 128], strides = [1, 1]} : vector<12x128xf32> to vector<2x128xf32>
    %14 = arith.truncf %9 : vector<2x32xf32> to vector<2x32xbf16>
    %cst_15 = arith.constant dense<0.000000e+00> : vector<2x128xf32>
    %15 = tpu.matmul %14, %6, %cst_15 {dimension_numbers = #tpu.dot_dimension_numbers<[1], [0], [0], [1], [0, 0, 1, 1], [], []>} : vector<2x32xbf16>, vector<32x128xbf16>, vector<2x128xf32> -> vector<2x128xf32>
    %16 = arith.addf %13, %15 : vector<2x128xf32>
    %17 = vector.extract_strided_slice %16 {offsets = [0, 0], sizes = [2, 32], strides = [1, 1]} : vector<2x128xf32> to vector<2x32xf32>
    %18 = arith.negf %17 : vector<2x32xf32>
    %19 = math.exp %18 : vector<2x32xf32>
    %cst_16 = arith.constant 1.000000e+00 : f32
    %20 = vector.broadcast %cst_16 : f32 to vector<2x32xf32>
    %21 = arith.addf %20, %19 : vector<2x32xf32>
    %22 = arith.divf %20, %21 : vector<2x32xf32>
    %23 = vector.extract_strided_slice %16 {offsets = [0, 32], sizes = [2, 32], strides = [1, 1]} : vector<2x128xf32> to vector<2x32xf32>
    %24 = arith.negf %23 : vector<2x32xf32>
    %25 = math.exp %24 : vector<2x32xf32>
    %cst_17 = arith.constant 1.000000e+00 : f32
    %26 = vector.broadcast %cst_17 : f32 to vector<2x32xf32>
    %27 = arith.addf %26, %25 : vector<2x32xf32>
    %28 = arith.divf %26, %27 : vector<2x32xf32>
    %29 = vector.extract_strided_slice %16 {offsets = [0, 64], sizes = [2, 32], strides = [1, 1]} : vector<2x128xf32> to vector<2x32xf32>
    %30 = math.tanh %29 : vector<2x32xf32>
    %31 = vector.extract_strided_slice %16 {offsets = [0, 96], sizes = [2, 32], strides = [1, 1]} : vector<2x128xf32> to vector<2x32xf32>
    %32 = arith.negf %31 : vector<2x32xf32>
    %33 = math.exp %32 : vector<2x32xf32>
    %cst_18 = arith.constant 1.000000e+00 : f32
    %34 = vector.broadcast %cst_18 : f32 to vector<2x32xf32>
    %35 = arith.addf %34, %33 : vector<2x32xf32>
    %36 = arith.divf %34, %35 : vector<2x32xf32>
    %37 = arith.mulf %28, %10 : vector<2x32xf32>
    %38 = arith.mulf %22, %30 : vector<2x32xf32>
    %39 = arith.addf %37, %38 : vector<2x32xf32>
    %40 = math.tanh %39 : vector<2x32xf32>
    %41 = arith.mulf %36, %40 : vector<2x32xf32>
    %42 = tpu.concatenate %41, %11 in 1 : vector<2x32xf32>, vector<2x32xf32> -> vector<2x64xf32>
    %43 = arith.truncf %42 : vector<2x64xf32> to vector<2x64xbf16>
    %cst_19 = arith.constant dense<0.000000e+00> : vector<2x128xf32>
    %44 = tpu.matmul %43, %7, %cst_19 {dimension_numbers = #tpu.dot_dimension_numbers<[1], [0], [0], [1], [0, 0, 1, 1], [], []>} : vector<2x64xbf16>, vector<64x128xbf16>, vector<2x128xf32> -> vector<2x128xf32>
    %45 = vector.broadcast %8 : vector<1x128xf32> to vector<2x128xf32>
    %46 = arith.addf %44, %45 : vector<2x128xf32>
    %47 = vector.extract_strided_slice %46 {offsets = [0, 0], sizes = [2, 32], strides = [1, 1]} : vector<2x128xf32> to vector<2x32xf32>
    %48 = arith.negf %47 : vector<2x32xf32>
    %49 = math.exp %48 : vector<2x32xf32>
    %cst_20 = arith.constant 1.000000e+00 : f32
    %50 = vector.broadcast %cst_20 : f32 to vector<2x32xf32>
    %51 = arith.addf %50, %49 : vector<2x32xf32>
    %52 = arith.divf %50, %51 : vector<2x32xf32>
    %53 = vector.extract_strided_slice %46 {offsets = [0, 32], sizes = [2, 32], strides = [1, 1]} : vector<2x128xf32> to vector<2x32xf32>
    %54 = arith.negf %53 : vector<2x32xf32>
    %55 = math.exp %54 : vector<2x32xf32>
    %cst_21 = arith.constant 1.000000e+00 : f32
    %56 = vector.broadcast %cst_21 : f32 to vector<2x32xf32>
    %57 = arith.addf %56, %55 : vector<2x32xf32>
    %58 = arith.divf %56, %57 : vector<2x32xf32>
    %59 = vector.extract_strided_slice %46 {offsets = [0, 64], sizes = [2, 32], strides = [1, 1]} : vector<2x128xf32> to vector<2x32xf32>
    %60 = math.tanh %59 : vector<2x32xf32>
    %61 = vector.extract_strided_slice %46 {offsets = [0, 96], sizes = [2, 32], strides = [1, 1]} : vector<2x128xf32> to vector<2x32xf32>
    %62 = arith.negf %61 : vector<2x32xf32>
    %63 = math.exp %62 : vector<2x32xf32>
    %cst_22 = arith.constant 1.000000e+00 : f32
    %64 = vector.broadcast %cst_22 : f32 to vector<2x32xf32>
    %65 = arith.addf %64, %63 : vector<2x32xf32>
    %66 = arith.divf %64, %65 : vector<2x32xf32>
    %67 = arith.mulf %58, %12 : vector<2x32xf32>
    %68 = arith.mulf %52, %60 : vector<2x32xf32>
    %69 = arith.addf %67, %68 : vector<2x32xf32>
    %70 = math.tanh %69 : vector<2x32xf32>
    %71 = arith.mulf %66, %70 : vector<2x32xf32>
    %72 = vector.extract_strided_slice %5 {offsets = [2, 0], sizes = [2, 128], strides = [1, 1]} : vector<12x128xf32> to vector<2x128xf32>
    %73 = arith.truncf %41 : vector<2x32xf32> to vector<2x32xbf16>
    %cst_23 = arith.constant dense<0.000000e+00> : vector<2x128xf32>
    %74 = tpu.matmul %73, %6, %cst_23 {dimension_numbers = #tpu.dot_dimension_numbers<[1], [0], [0], [1], [0, 0, 1, 1], [], []>} : vector<2x32xbf16>, vector<32x128xbf16>, vector<2x128xf32> -> vector<2x128xf32>
    %75 = arith.addf %72, %74 : vector<2x128xf32>
    %76 = vector.extract_strided_slice %75 {offsets = [0, 0], sizes = [2, 32], strides = [1, 1]} : vector<2x128xf32> to vector<2x32xf32>
    %77 = arith.negf %76 : vector<2x32xf32>
    %78 = math.exp %77 : vector<2x32xf32>
    %cst_24 = arith.constant 1.000000e+00 : f32
    %79 = vector.broadcast %cst_24 : f32 to vector<2x32xf32>
    %80 = arith.addf %79, %78 : vector<2x32xf32>
    %81 = arith.divf %79, %80 : vector<2x32xf32>
    %82 = vector.extract_strided_slice %75 {offsets = [0, 32], sizes = [2, 32], strides = [1, 1]} : vector<2x128xf32> to vector<2x32xf32>
    %83 = arith.negf %82 : vector<2x32xf32>
    %84 = math.exp %83 : vector<2x32xf32>
    %cst_25 = arith.constant 1.000000e+00 : f32
    %85 = vector.broadcast %cst_25 : f32 to vector<2x32xf32>
    %86 = arith.addf %85, %84 : vector<2x32xf32>
    %87 = arith.divf %85, %86 : vector<2x32xf32>
    %88 = vector.extract_strided_slice %75 {offsets = [0, 64], sizes = [2, 32], strides = [1, 1]} : vector<2x128xf32> to vector<2x32xf32>
    %89 = math.tanh %88 : vector<2x32xf32>
    %90 = vector.extract_strided_slice %75 {offsets = [0, 96], sizes = [2, 32], strides = [1, 1]} : vector<2x128xf32> to vector<2x32xf32>
    %91 = arith.negf %90 : vector<2x32xf32>
    %92 = math.exp %91 : vector<2x32xf32>
    %cst_26 = arith.constant 1.000000e+00 : f32
    %93 = vector.broadcast %cst_26 : f32 to vector<2x32xf32>
    %94 = arith.addf %93, %92 : vector<2x32xf32>
    %95 = arith.divf %93, %94 : vector<2x32xf32>
    %96 = arith.mulf %87, %39 : vector<2x32xf32>
    %97 = arith.mulf %81, %89 : vector<2x32xf32>
    %98 = arith.addf %96, %97 : vector<2x32xf32>
    %99 = math.tanh %98 : vector<2x32xf32>
    %100 = arith.mulf %95, %99 : vector<2x32xf32>
    %101 = tpu.concatenate %100, %71 in 1 : vector<2x32xf32>, vector<2x32xf32> -> vector<2x64xf32>
    %102 = arith.truncf %101 : vector<2x64xf32> to vector<2x64xbf16>
    %cst_27 = arith.constant dense<0.000000e+00> : vector<2x128xf32>
    %103 = tpu.matmul %102, %7, %cst_27 {dimension_numbers = #tpu.dot_dimension_numbers<[1], [0], [0], [1], [0, 0, 1, 1], [], []>} : vector<2x64xbf16>, vector<64x128xbf16>, vector<2x128xf32> -> vector<2x128xf32>
    %104 = vector.broadcast %8 : vector<1x128xf32> to vector<2x128xf32>
    %105 = arith.addf %103, %104 : vector<2x128xf32>
    %106 = vector.extract_strided_slice %105 {offsets = [0, 0], sizes = [2, 32], strides = [1, 1]} : vector<2x128xf32> to vector<2x32xf32>
    %107 = arith.negf %106 : vector<2x32xf32>
    %108 = math.exp %107 : vector<2x32xf32>
    %cst_28 = arith.constant 1.000000e+00 : f32
    %109 = vector.broadcast %cst_28 : f32 to vector<2x32xf32>
    %110 = arith.addf %109, %108 : vector<2x32xf32>
    %111 = arith.divf %109, %110 : vector<2x32xf32>
    %112 = vector.extract_strided_slice %105 {offsets = [0, 32], sizes = [2, 32], strides = [1, 1]} : vector<2x128xf32> to vector<2x32xf32>
    %113 = arith.negf %112 : vector<2x32xf32>
    %114 = math.exp %113 : vector<2x32xf32>
    %cst_29 = arith.constant 1.000000e+00 : f32
    %115 = vector.broadcast %cst_29 : f32 to vector<2x32xf32>
    %116 = arith.addf %115, %114 : vector<2x32xf32>
    %117 = arith.divf %115, %116 : vector<2x32xf32>
    %118 = vector.extract_strided_slice %105 {offsets = [0, 64], sizes = [2, 32], strides = [1, 1]} : vector<2x128xf32> to vector<2x32xf32>
    %119 = math.tanh %118 : vector<2x32xf32>
    %120 = vector.extract_strided_slice %105 {offsets = [0, 96], sizes = [2, 32], strides = [1, 1]} : vector<2x128xf32> to vector<2x32xf32>
    %121 = arith.negf %120 : vector<2x32xf32>
    %122 = math.exp %121 : vector<2x32xf32>
    %cst_30 = arith.constant 1.000000e+00 : f32
    %123 = vector.broadcast %cst_30 : f32 to vector<2x32xf32>
    %124 = arith.addf %123, %122 : vector<2x32xf32>
    %125 = arith.divf %123, %124 : vector<2x32xf32>
    %126 = arith.mulf %117, %69 : vector<2x32xf32>
    %127 = arith.mulf %111, %119 : vector<2x32xf32>
    %128 = arith.addf %126, %127 : vector<2x32xf32>
    %129 = math.tanh %128 : vector<2x32xf32>
    %130 = arith.mulf %125, %129 : vector<2x32xf32>
    %131 = vector.extract_strided_slice %5 {offsets = [4, 0], sizes = [2, 128], strides = [1, 1]} : vector<12x128xf32> to vector<2x128xf32>
    %132 = arith.truncf %100 : vector<2x32xf32> to vector<2x32xbf16>
    %cst_31 = arith.constant dense<0.000000e+00> : vector<2x128xf32>
    %133 = tpu.matmul %132, %6, %cst_31 {dimension_numbers = #tpu.dot_dimension_numbers<[1], [0], [0], [1], [0, 0, 1, 1], [], []>} : vector<2x32xbf16>, vector<32x128xbf16>, vector<2x128xf32> -> vector<2x128xf32>
    %134 = arith.addf %131, %133 : vector<2x128xf32>
    %135 = vector.extract_strided_slice %134 {offsets = [0, 0], sizes = [2, 32], strides = [1, 1]} : vector<2x128xf32> to vector<2x32xf32>
    %136 = arith.negf %135 : vector<2x32xf32>
    %137 = math.exp %136 : vector<2x32xf32>
    %cst_32 = arith.constant 1.000000e+00 : f32
    %138 = vector.broadcast %cst_32 : f32 to vector<2x32xf32>
    %139 = arith.addf %138, %137 : vector<2x32xf32>
    %140 = arith.divf %138, %139 : vector<2x32xf32>
    %141 = vector.extract_strided_slice %134 {offsets = [0, 32], sizes = [2, 32], strides = [1, 1]} : vector<2x128xf32> to vector<2x32xf32>
    %142 = arith.negf %141 : vector<2x32xf32>
    %143 = math.exp %142 : vector<2x32xf32>
    %cst_33 = arith.constant 1.000000e+00 : f32
    %144 = vector.broadcast %cst_33 : f32 to vector<2x32xf32>
    %145 = arith.addf %144, %143 : vector<2x32xf32>
    %146 = arith.divf %144, %145 : vector<2x32xf32>
    %147 = vector.extract_strided_slice %134 {offsets = [0, 64], sizes = [2, 32], strides = [1, 1]} : vector<2x128xf32> to vector<2x32xf32>
    %148 = math.tanh %147 : vector<2x32xf32>
    %149 = vector.extract_strided_slice %134 {offsets = [0, 96], sizes = [2, 32], strides = [1, 1]} : vector<2x128xf32> to vector<2x32xf32>
    %150 = arith.negf %149 : vector<2x32xf32>
    %151 = math.exp %150 : vector<2x32xf32>
    %cst_34 = arith.constant 1.000000e+00 : f32
    %152 = vector.broadcast %cst_34 : f32 to vector<2x32xf32>
    %153 = arith.addf %152, %151 : vector<2x32xf32>
    %154 = arith.divf %152, %153 : vector<2x32xf32>
    %155 = arith.mulf %146, %98 : vector<2x32xf32>
    %156 = arith.mulf %140, %148 : vector<2x32xf32>
    %157 = arith.addf %155, %156 : vector<2x32xf32>
    %158 = math.tanh %157 : vector<2x32xf32>
    %159 = arith.mulf %154, %158 : vector<2x32xf32>
    %160 = tpu.concatenate %159, %130 in 1 : vector<2x32xf32>, vector<2x32xf32> -> vector<2x64xf32>
    %161 = arith.truncf %160 : vector<2x64xf32> to vector<2x64xbf16>
    %cst_35 = arith.constant dense<0.000000e+00> : vector<2x128xf32>
    %162 = tpu.matmul %161, %7, %cst_35 {dimension_numbers = #tpu.dot_dimension_numbers<[1], [0], [0], [1], [0, 0, 1, 1], [], []>} : vector<2x64xbf16>, vector<64x128xbf16>, vector<2x128xf32> -> vector<2x128xf32>
    %163 = vector.broadcast %8 : vector<1x128xf32> to vector<2x128xf32>
    %164 = arith.addf %162, %163 : vector<2x128xf32>
    %165 = vector.extract_strided_slice %164 {offsets = [0, 0], sizes = [2, 32], strides = [1, 1]} : vector<2x128xf32> to vector<2x32xf32>
    %166 = arith.negf %165 : vector<2x32xf32>
    %167 = math.exp %166 : vector<2x32xf32>
    %cst_36 = arith.constant 1.000000e+00 : f32
    %168 = vector.broadcast %cst_36 : f32 to vector<2x32xf32>
    %169 = arith.addf %168, %167 : vector<2x32xf32>
    %170 = arith.divf %168, %169 : vector<2x32xf32>
    %171 = vector.extract_strided_slice %164 {offsets = [0, 32], sizes = [2, 32], strides = [1, 1]} : vector<2x128xf32> to vector<2x32xf32>
    %172 = arith.negf %171 : vector<2x32xf32>
    %173 = math.exp %172 : vector<2x32xf32>
    %cst_37 = arith.constant 1.000000e+00 : f32
    %174 = vector.broadcast %cst_37 : f32 to vector<2x32xf32>
    %175 = arith.addf %174, %173 : vector<2x32xf32>
    %176 = arith.divf %174, %175 : vector<2x32xf32>
    %177 = vector.extract_strided_slice %164 {offsets = [0, 64], sizes = [2, 32], strides = [1, 1]} : vector<2x128xf32> to vector<2x32xf32>
    %178 = math.tanh %177 : vector<2x32xf32>
    %179 = vector.extract_strided_slice %164 {offsets = [0, 96], sizes = [2, 32], strides = [1, 1]} : vector<2x128xf32> to vector<2x32xf32>
    %180 = arith.negf %179 : vector<2x32xf32>
    %181 = math.exp %180 : vector<2x32xf32>
    %cst_38 = arith.constant 1.000000e+00 : f32
    %182 = vector.broadcast %cst_38 : f32 to vector<2x32xf32>
    %183 = arith.addf %182, %181 : vector<2x32xf32>
    %184 = arith.divf %182, %183 : vector<2x32xf32>
    %185 = arith.mulf %176, %128 : vector<2x32xf32>
    %186 = arith.mulf %170, %178 : vector<2x32xf32>
    %187 = arith.addf %185, %186 : vector<2x32xf32>
    %188 = math.tanh %187 : vector<2x32xf32>
    %189 = arith.mulf %184, %188 : vector<2x32xf32>
    %190 = vector.extract_strided_slice %5 {offsets = [6, 0], sizes = [2, 128], strides = [1, 1]} : vector<12x128xf32> to vector<2x128xf32>
    %191 = arith.truncf %159 : vector<2x32xf32> to vector<2x32xbf16>
    %cst_39 = arith.constant dense<0.000000e+00> : vector<2x128xf32>
    %192 = tpu.matmul %191, %6, %cst_39 {dimension_numbers = #tpu.dot_dimension_numbers<[1], [0], [0], [1], [0, 0, 1, 1], [], []>} : vector<2x32xbf16>, vector<32x128xbf16>, vector<2x128xf32> -> vector<2x128xf32>
    %193 = arith.addf %190, %192 : vector<2x128xf32>
    %194 = vector.extract_strided_slice %193 {offsets = [0, 0], sizes = [2, 32], strides = [1, 1]} : vector<2x128xf32> to vector<2x32xf32>
    %195 = arith.negf %194 : vector<2x32xf32>
    %196 = math.exp %195 : vector<2x32xf32>
    %cst_40 = arith.constant 1.000000e+00 : f32
    %197 = vector.broadcast %cst_40 : f32 to vector<2x32xf32>
    %198 = arith.addf %197, %196 : vector<2x32xf32>
    %199 = arith.divf %197, %198 : vector<2x32xf32>
    %200 = vector.extract_strided_slice %193 {offsets = [0, 32], sizes = [2, 32], strides = [1, 1]} : vector<2x128xf32> to vector<2x32xf32>
    %201 = arith.negf %200 : vector<2x32xf32>
    %202 = math.exp %201 : vector<2x32xf32>
    %cst_41 = arith.constant 1.000000e+00 : f32
    %203 = vector.broadcast %cst_41 : f32 to vector<2x32xf32>
    %204 = arith.addf %203, %202 : vector<2x32xf32>
    %205 = arith.divf %203, %204 : vector<2x32xf32>
    %206 = vector.extract_strided_slice %193 {offsets = [0, 64], sizes = [2, 32], strides = [1, 1]} : vector<2x128xf32> to vector<2x32xf32>
    %207 = math.tanh %206 : vector<2x32xf32>
    %208 = vector.extract_strided_slice %193 {offsets = [0, 96], sizes = [2, 32], strides = [1, 1]} : vector<2x128xf32> to vector<2x32xf32>
    %209 = arith.negf %208 : vector<2x32xf32>
    %210 = math.exp %209 : vector<2x32xf32>
    %cst_42 = arith.constant 1.000000e+00 : f32
    %211 = vector.broadcast %cst_42 : f32 to vector<2x32xf32>
    %212 = arith.addf %211, %210 : vector<2x32xf32>
    %213 = arith.divf %211, %212 : vector<2x32xf32>
    %214 = arith.mulf %205, %157 : vector<2x32xf32>
    %215 = arith.mulf %199, %207 : vector<2x32xf32>
    %216 = arith.addf %214, %215 : vector<2x32xf32>
    %217 = math.tanh %216 : vector<2x32xf32>
    %218 = arith.mulf %213, %217 : vector<2x32xf32>
    %219 = tpu.concatenate %218, %189 in 1 : vector<2x32xf32>, vector<2x32xf32> -> vector<2x64xf32>
    %220 = arith.truncf %219 : vector<2x64xf32> to vector<2x64xbf16>
    %cst_43 = arith.constant dense<0.000000e+00> : vector<2x128xf32>
    %221 = tpu.matmul %220, %7, %cst_43 {dimension_numbers = #tpu.dot_dimension_numbers<[1], [0], [0], [1], [0, 0, 1, 1], [], []>} : vector<2x64xbf16>, vector<64x128xbf16>, vector<2x128xf32> -> vector<2x128xf32>
    %222 = vector.broadcast %8 : vector<1x128xf32> to vector<2x128xf32>
    %223 = arith.addf %221, %222 : vector<2x128xf32>
    %224 = vector.extract_strided_slice %223 {offsets = [0, 0], sizes = [2, 32], strides = [1, 1]} : vector<2x128xf32> to vector<2x32xf32>
    %225 = arith.negf %224 : vector<2x32xf32>
    %226 = math.exp %225 : vector<2x32xf32>
    %cst_44 = arith.constant 1.000000e+00 : f32
    %227 = vector.broadcast %cst_44 : f32 to vector<2x32xf32>
    %228 = arith.addf %227, %226 : vector<2x32xf32>
    %229 = arith.divf %227, %228 : vector<2x32xf32>
    %230 = vector.extract_strided_slice %223 {offsets = [0, 32], sizes = [2, 32], strides = [1, 1]} : vector<2x128xf32> to vector<2x32xf32>
    %231 = arith.negf %230 : vector<2x32xf32>
    %232 = math.exp %231 : vector<2x32xf32>
    %cst_45 = arith.constant 1.000000e+00 : f32
    %233 = vector.broadcast %cst_45 : f32 to vector<2x32xf32>
    %234 = arith.addf %233, %232 : vector<2x32xf32>
    %235 = arith.divf %233, %234 : vector<2x32xf32>
    %236 = vector.extract_strided_slice %223 {offsets = [0, 64], sizes = [2, 32], strides = [1, 1]} : vector<2x128xf32> to vector<2x32xf32>
    %237 = math.tanh %236 : vector<2x32xf32>
    %238 = vector.extract_strided_slice %223 {offsets = [0, 96], sizes = [2, 32], strides = [1, 1]} : vector<2x128xf32> to vector<2x32xf32>
    %239 = arith.negf %238 : vector<2x32xf32>
    %240 = math.exp %239 : vector<2x32xf32>
    %cst_46 = arith.constant 1.000000e+00 : f32
    %241 = vector.broadcast %cst_46 : f32 to vector<2x32xf32>
    %242 = arith.addf %241, %240 : vector<2x32xf32>
    %243 = arith.divf %241, %242 : vector<2x32xf32>
    %244 = arith.mulf %235, %187 : vector<2x32xf32>
    %245 = arith.mulf %229, %237 : vector<2x32xf32>
    %246 = arith.addf %244, %245 : vector<2x32xf32>
    %247 = math.tanh %246 : vector<2x32xf32>
    %248 = arith.mulf %243, %247 : vector<2x32xf32>
    %249 = vector.extract_strided_slice %5 {offsets = [8, 0], sizes = [2, 128], strides = [1, 1]} : vector<12x128xf32> to vector<2x128xf32>
    %250 = arith.truncf %218 : vector<2x32xf32> to vector<2x32xbf16>
    %cst_47 = arith.constant dense<0.000000e+00> : vector<2x128xf32>
    %251 = tpu.matmul %250, %6, %cst_47 {dimension_numbers = #tpu.dot_dimension_numbers<[1], [0], [0], [1], [0, 0, 1, 1], [], []>} : vector<2x32xbf16>, vector<32x128xbf16>, vector<2x128xf32> -> vector<2x128xf32>
    %252 = arith.addf %249, %251 : vector<2x128xf32>
    %253 = vector.extract_strided_slice %252 {offsets = [0, 0], sizes = [2, 32], strides = [1, 1]} : vector<2x128xf32> to vector<2x32xf32>
    %254 = arith.negf %253 : vector<2x32xf32>
    %255 = math.exp %254 : vector<2x32xf32>
    %cst_48 = arith.constant 1.000000e+00 : f32
    %256 = vector.broadcast %cst_48 : f32 to vector<2x32xf32>
    %257 = arith.addf %256, %255 : vector<2x32xf32>
    %258 = arith.divf %256, %257 : vector<2x32xf32>
    %259 = vector.extract_strided_slice %252 {offsets = [0, 32], sizes = [2, 32], strides = [1, 1]} : vector<2x128xf32> to vector<2x32xf32>
    %260 = arith.negf %259 : vector<2x32xf32>
    %261 = math.exp %260 : vector<2x32xf32>
    %cst_49 = arith.constant 1.000000e+00 : f32
    %262 = vector.broadcast %cst_49 : f32 to vector<2x32xf32>
    %263 = arith.addf %262, %261 : vector<2x32xf32>
    %264 = arith.divf %262, %263 : vector<2x32xf32>
    %265 = vector.extract_strided_slice %252 {offsets = [0, 64], sizes = [2, 32], strides = [1, 1]} : vector<2x128xf32> to vector<2x32xf32>
    %266 = math.tanh %265 : vector<2x32xf32>
    %267 = vector.extract_strided_slice %252 {offsets = [0, 96], sizes = [2, 32], strides = [1, 1]} : vector<2x128xf32> to vector<2x32xf32>
    %268 = arith.negf %267 : vector<2x32xf32>
    %269 = math.exp %268 : vector<2x32xf32>
    %cst_50 = arith.constant 1.000000e+00 : f32
    %270 = vector.broadcast %cst_50 : f32 to vector<2x32xf32>
    %271 = arith.addf %270, %269 : vector<2x32xf32>
    %272 = arith.divf %270, %271 : vector<2x32xf32>
    %273 = arith.mulf %264, %216 : vector<2x32xf32>
    %274 = arith.mulf %258, %266 : vector<2x32xf32>
    %275 = arith.addf %273, %274 : vector<2x32xf32>
    %276 = math.tanh %275 : vector<2x32xf32>
    %277 = arith.mulf %272, %276 : vector<2x32xf32>
    %278 = tpu.concatenate %277, %248 in 1 : vector<2x32xf32>, vector<2x32xf32> -> vector<2x64xf32>
    %279 = arith.truncf %278 : vector<2x64xf32> to vector<2x64xbf16>
    %cst_51 = arith.constant dense<0.000000e+00> : vector<2x128xf32>
    %280 = tpu.matmul %279, %7, %cst_51 {dimension_numbers = #tpu.dot_dimension_numbers<[1], [0], [0], [1], [0, 0, 1, 1], [], []>} : vector<2x64xbf16>, vector<64x128xbf16>, vector<2x128xf32> -> vector<2x128xf32>
    %281 = vector.broadcast %8 : vector<1x128xf32> to vector<2x128xf32>
    %282 = arith.addf %280, %281 : vector<2x128xf32>
    %283 = vector.extract_strided_slice %282 {offsets = [0, 0], sizes = [2, 32], strides = [1, 1]} : vector<2x128xf32> to vector<2x32xf32>
    %284 = arith.negf %283 : vector<2x32xf32>
    %285 = math.exp %284 : vector<2x32xf32>
    %cst_52 = arith.constant 1.000000e+00 : f32
    %286 = vector.broadcast %cst_52 : f32 to vector<2x32xf32>
    %287 = arith.addf %286, %285 : vector<2x32xf32>
    %288 = arith.divf %286, %287 : vector<2x32xf32>
    %289 = vector.extract_strided_slice %282 {offsets = [0, 32], sizes = [2, 32], strides = [1, 1]} : vector<2x128xf32> to vector<2x32xf32>
    %290 = arith.negf %289 : vector<2x32xf32>
    %291 = math.exp %290 : vector<2x32xf32>
    %cst_53 = arith.constant 1.000000e+00 : f32
    %292 = vector.broadcast %cst_53 : f32 to vector<2x32xf32>
    %293 = arith.addf %292, %291 : vector<2x32xf32>
    %294 = arith.divf %292, %293 : vector<2x32xf32>
    %295 = vector.extract_strided_slice %282 {offsets = [0, 64], sizes = [2, 32], strides = [1, 1]} : vector<2x128xf32> to vector<2x32xf32>
    %296 = math.tanh %295 : vector<2x32xf32>
    %297 = vector.extract_strided_slice %282 {offsets = [0, 96], sizes = [2, 32], strides = [1, 1]} : vector<2x128xf32> to vector<2x32xf32>
    %298 = arith.negf %297 : vector<2x32xf32>
    %299 = math.exp %298 : vector<2x32xf32>
    %cst_54 = arith.constant 1.000000e+00 : f32
    %300 = vector.broadcast %cst_54 : f32 to vector<2x32xf32>
    %301 = arith.addf %300, %299 : vector<2x32xf32>
    %302 = arith.divf %300, %301 : vector<2x32xf32>
    %303 = arith.mulf %294, %246 : vector<2x32xf32>
    %304 = arith.mulf %288, %296 : vector<2x32xf32>
    %305 = arith.addf %303, %304 : vector<2x32xf32>
    %306 = math.tanh %305 : vector<2x32xf32>
    %307 = arith.mulf %302, %306 : vector<2x32xf32>
    %308 = vector.extract_strided_slice %5 {offsets = [10, 0], sizes = [2, 128], strides = [1, 1]} : vector<12x128xf32> to vector<2x128xf32>
    %309 = arith.truncf %277 : vector<2x32xf32> to vector<2x32xbf16>
    %cst_55 = arith.constant dense<0.000000e+00> : vector<2x128xf32>
    %310 = tpu.matmul %309, %6, %cst_55 {dimension_numbers = #tpu.dot_dimension_numbers<[1], [0], [0], [1], [0, 0, 1, 1], [], []>} : vector<2x32xbf16>, vector<32x128xbf16>, vector<2x128xf32> -> vector<2x128xf32>
    %311 = arith.addf %308, %310 : vector<2x128xf32>
    %312 = vector.extract_strided_slice %311 {offsets = [0, 0], sizes = [2, 32], strides = [1, 1]} : vector<2x128xf32> to vector<2x32xf32>
    %313 = arith.negf %312 : vector<2x32xf32>
    %314 = math.exp %313 : vector<2x32xf32>
    %cst_56 = arith.constant 1.000000e+00 : f32
    %315 = vector.broadcast %cst_56 : f32 to vector<2x32xf32>
    %316 = arith.addf %315, %314 : vector<2x32xf32>
    %317 = arith.divf %315, %316 : vector<2x32xf32>
    %318 = vector.extract_strided_slice %311 {offsets = [0, 32], sizes = [2, 32], strides = [1, 1]} : vector<2x128xf32> to vector<2x32xf32>
    %319 = arith.negf %318 : vector<2x32xf32>
    %320 = math.exp %319 : vector<2x32xf32>
    %cst_57 = arith.constant 1.000000e+00 : f32
    %321 = vector.broadcast %cst_57 : f32 to vector<2x32xf32>
    %322 = arith.addf %321, %320 : vector<2x32xf32>
    %323 = arith.divf %321, %322 : vector<2x32xf32>
    %324 = vector.extract_strided_slice %311 {offsets = [0, 64], sizes = [2, 32], strides = [1, 1]} : vector<2x128xf32> to vector<2x32xf32>
    %325 = math.tanh %324 : vector<2x32xf32>
    %326 = vector.extract_strided_slice %311 {offsets = [0, 96], sizes = [2, 32], strides = [1, 1]} : vector<2x128xf32> to vector<2x32xf32>
    %327 = arith.negf %326 : vector<2x32xf32>
    %328 = math.exp %327 : vector<2x32xf32>
    %cst_58 = arith.constant 1.000000e+00 : f32
    %329 = vector.broadcast %cst_58 : f32 to vector<2x32xf32>
    %330 = arith.addf %329, %328 : vector<2x32xf32>
    %331 = arith.divf %329, %330 : vector<2x32xf32>
    %332 = arith.mulf %323, %275 : vector<2x32xf32>
    %333 = arith.mulf %317, %325 : vector<2x32xf32>
    %334 = arith.addf %332, %333 : vector<2x32xf32>
    %335 = math.tanh %334 : vector<2x32xf32>
    %336 = arith.mulf %331, %335 : vector<2x32xf32>
    %337 = tpu.concatenate %336, %307 in 1 : vector<2x32xf32>, vector<2x32xf32> -> vector<2x64xf32>
    %338 = arith.truncf %337 : vector<2x64xf32> to vector<2x64xbf16>
    %cst_59 = arith.constant dense<0.000000e+00> : vector<2x128xf32>
    %339 = tpu.matmul %338, %7, %cst_59 {dimension_numbers = #tpu.dot_dimension_numbers<[1], [0], [0], [1], [0, 0, 1, 1], [], []>} : vector<2x64xbf16>, vector<64x128xbf16>, vector<2x128xf32> -> vector<2x128xf32>
    %340 = vector.broadcast %8 : vector<1x128xf32> to vector<2x128xf32>
    %341 = arith.addf %339, %340 : vector<2x128xf32>
    %342 = vector.extract_strided_slice %341 {offsets = [0, 0], sizes = [2, 32], strides = [1, 1]} : vector<2x128xf32> to vector<2x32xf32>
    %343 = arith.negf %342 : vector<2x32xf32>
    %344 = math.exp %343 : vector<2x32xf32>
    %cst_60 = arith.constant 1.000000e+00 : f32
    %345 = vector.broadcast %cst_60 : f32 to vector<2x32xf32>
    %346 = arith.addf %345, %344 : vector<2x32xf32>
    %347 = arith.divf %345, %346 : vector<2x32xf32>
    %348 = vector.extract_strided_slice %341 {offsets = [0, 32], sizes = [2, 32], strides = [1, 1]} : vector<2x128xf32> to vector<2x32xf32>
    %349 = arith.negf %348 : vector<2x32xf32>
    %350 = math.exp %349 : vector<2x32xf32>
    %cst_61 = arith.constant 1.000000e+00 : f32
    %351 = vector.broadcast %cst_61 : f32 to vector<2x32xf32>
    %352 = arith.addf %351, %350 : vector<2x32xf32>
    %353 = arith.divf %351, %352 : vector<2x32xf32>
    %354 = vector.extract_strided_slice %341 {offsets = [0, 64], sizes = [2, 32], strides = [1, 1]} : vector<2x128xf32> to vector<2x32xf32>
    %355 = math.tanh %354 : vector<2x32xf32>
    %356 = vector.extract_strided_slice %341 {offsets = [0, 96], sizes = [2, 32], strides = [1, 1]} : vector<2x128xf32> to vector<2x32xf32>
    %357 = arith.negf %356 : vector<2x32xf32>
    %358 = math.exp %357 : vector<2x32xf32>
    %cst_62 = arith.constant 1.000000e+00 : f32
    %359 = vector.broadcast %cst_62 : f32 to vector<2x32xf32>
    %360 = arith.addf %359, %358 : vector<2x32xf32>
    %361 = arith.divf %359, %360 : vector<2x32xf32>
    %362 = arith.mulf %353, %305 : vector<2x32xf32>
    %363 = arith.mulf %347, %355 : vector<2x32xf32>
    %364 = arith.addf %362, %363 : vector<2x32xf32>
    %365 = math.tanh %364 : vector<2x32xf32>
    %366 = arith.mulf %361, %365 : vector<2x32xf32>
    %367 = arith.truncf %366 : vector<2x32xf32> to vector<2x32xbf16>
    %c0_63 = arith.constant 0 : index
    %c0_64 = arith.constant 0 : index
    %368 = vector.load %arg6[%c0_63, %c0_64] : memref<32x10xbf16, #tpu.memory_space<vmem>>, vector<32x10xbf16>
    %cst_65 = arith.constant dense<0.000000e+00> : vector<2x10xf32>
    %369 = tpu.matmul %367, %368, %cst_65 {dimension_numbers = #tpu.dot_dimension_numbers<[1], [0], [0], [1], [0, 0, 1, 1], [], []>} : vector<2x32xbf16>, vector<32x10xbf16>, vector<2x10xf32> -> vector<2x10xf32>
    %c0_66 = arith.constant 0 : index
    %c0_67 = arith.constant 0 : index
    %370 = vector.load %arg7[%c0_66, %c0_67] : memref<1x10xf32, #tpu.memory_space<vmem>>, vector<1x10xf32>
    %371 = vector.broadcast %370 : vector<1x10xf32> to vector<2x10xf32>
    %372 = arith.addf %369, %371 : vector<2x10xf32>
    %c0_68 = arith.constant 0 : index
    %c0_69 = arith.constant 0 : index
    %373 = vector.load %arg8[%c0_68, %c0_69] : memref<2x10xf32, #tpu.memory_space<vmem>>, vector<2x10xf32>
    tpu.vector_store %arg8[%c0_68, %c0_69], %372 {strides = array<i32>} : memref<2x10xf32, #tpu.memory_space<vmem>>, vector<2x10xf32>,
    return
  }
}

</mosaic_0001>

<bundles_post_ra>
// kernel: classification_forward.1
= control target key start
LH: loop header
LB: loop body
LE: loop exit
PB: predicated region body
PF: predicated region fallthrough
CT: control target
= control target key end

     0   :  { %vm3352_vm0 = vmmov 0   ;;  %s4107_s0 = inlined_call_operand.vmem [shape: bf16[12,2048], index: 0, kind: input, shape index: {}]   ;;  %s4108_s1 = inlined_call_operand.vmem [shape: bf16[2048,128], index: 1, kind: input, shape index: {}]   ;;  %s4109_s2 = inlined_call_operand.vmem [shape: bf16[32,128], index: 2, kind: input, shape index: {}]   ;;  %s4110_s3 = inlined_call_operand.vmem [shape: f32[1,128], index: 3, kind: input, shape index: {}]   ;;  %s4111_s4 = inlined_call_operand.vmem [shape: bf16[64,128], index: 4, kind: input, shape index: {}]   ;;  %s4112_s5 = inlined_call_operand.vmem [shape: f32[1,128], index: 5, kind: input, shape index: {}]   ;;  %s4113_s6 = inlined_call_operand.vmem [shape: bf16[32,10], index: 6, kind: input, shape index: {}]   ;;  %s4114_s7 = inlined_call_operand.vmem [shape: f32[1,10], index: 7, kind: input, shape index: {}]   ;;  %s4115_s8 = inlined_call_operand.hbm [shape: f32[2,10], index: 8, kind: output, shape index: {}]  }
   0x1   :  { %v3097_v0 = vld [vmem:[%s4108_s1 + $0x78] sm:$0xff]   ;;  %v3101_v4 = vld [vmem:[%s4108_s1 + $0x70] sm:$0xff]   ;;  %v3105_v8 = vld [vmem:[%s4108_s1 + $0x68] sm:$0xff]  }
   0x2   :  { %v3098_v1 = vld [vmem:[%s4108_s1 + $0xf8] sm:$0xff]   ;;  %2736 = vmatprep.subr.bf16.mxu0 %v3097_v0  ;;  %v3102_v5 = vld [vmem:[%s4108_s1 + $0xf0] sm:$0xff]   ;;  %v3106_v9 = vld [vmem:[%s4108_s1 + $0xe8] sm:$0xff]  }
   0x3   :  { %v3099_v2 = vld [vmem:[%s4108_s1 + $0x38] sm:$0xff]   ;;  %2758 = vmatprep.subr.bf16.mxu1 %v3098_v1  ;;  %v3103_v6 = vld [vmem:[%s4108_s1 + $0x30] sm:$0xff]   ;;  %v3107_v10 = vld [vmem:[%s4108_s1 + $0x28] sm:$0xff]  }
   0x4   :  { %v3100_v3 = vld [vmem:[%s4108_s1 + $0xb8] sm:$0xff]   ;;  %2737 = vmatpush3.bf16.msra.mxu0 %v3099_v2  ;;  %v3104_v7 = vld [vmem:[%s4108_s1 + $0xb0] sm:$0xff]   ;;  %v3108_v11 = vld [vmem:[%s4108_s1 + $0xa8] sm:$0xff]  }
   0x5   :  { %2759 = vmatpush3.bf16.msra.mxu1 %v3100_v3  ;;  %2738 = vmatprep.subr.bf16.mxu0 %v3101_v4  ;;  %v3109_v12 = vld [vmem:[%s4108_s1 + $0x60] sm:$0xff]   ;;  %v3113_v16 = vld [vmem:[%s4108_s1 + $0x58] sm:$0xff]   ;;  %v3117_v20 = vld [vmem:[%s4108_s1 + $0x50] sm:$0xff]  }
   0x6   :  { %2760 = vmatprep.subr.bf16.mxu1 %v3102_v5  ;;  %v3110_v13 = vld [vmem:[%s4108_s1 + $0xe0] sm:$0xff]   ;;  %v3114_v17 = vld [vmem:[%s4108_s1 + $0xd8] sm:$0xff]   ;;  %v3118_v21 = vld [vmem:[%s4108_s1 + $0xd0] sm:$0xff]  }
   0x7   :  { %v3111_v14 = vld [vmem:[%s4108_s1 + $0x20] sm:$0xff]   ;;  %v3115_v18 = vld [vmem:[%s4108_s1 + $0x18] sm:$0xff]   ;;  %v3119_v22 = vld [vmem:[%s4108_s1 + $0x10] sm:$0xff]  }
   0x8   :  { %2739 = vmatpush3.bf16.msra.mxu0 %v3103_v6  ;;  %v3112_v15 = vld [vmem:[%s4108_s1 + $0xa0] sm:$0xff]   ;;  %v3116_v19 = vld [vmem:[%s4108_s1 + $0x98] sm:$0xff]   ;;  %v3120_v23 = vld [vmem:[%s4108_s1 + $0x90] sm:$0xff]  }
   0x9   :  { %2761 = vmatpush3.bf16.msra.mxu1 %v3104_v7  ;;  %2740 = vmatprep.subr.bf16.mxu0 %v3105_v8  ;;  %v3121_v24 = vld [vmem:[%s4108_s1 + $0x48] sm:$0xff]   ;;  %v3125_v28 = vld [vmem:[%s4108_s1 + $0x40] sm:$0xff]   ;;  %v3129_v40 = vld [vmem:[%s4108_s1 + $0x178] sm:$0xff]  }
   0xa   :  { %2762 = vmatprep.subr.bf16.mxu1 %v3106_v9  ;;  %v3122_v25 = vld [vmem:[%s4108_s1 + $0xc8] sm:$0xff]   ;;  %v3126_v29 = vld [vmem:[%s4108_s1 + $0xc0] sm:$0xff]   ;;  %v3130_v41 = vld [vmem:[%s4108_s1 + $0x1f8] sm:$0xff]  }
   0xb   :  { %v3123_v26 = vld [vmem:[%s4108_s1 + $0x8] sm:$0xff]   ;;  %v3127_v30 = vld [vmem:[%s4108_s1] sm:$0xff]   ;;  %v3131_v42 = vld [vmem:[%s4108_s1 + $0x138] sm:$0xff]  }
   0xc   :  { %2741 = vmatpush3.bf16.msra.mxu0 %v3107_v10  ;;  %v3124_v27 = vld [vmem:[%s4108_s1 + $0x88] sm:$0xff]   ;;  %v3128_v31 = vld [vmem:[%s4108_s1 + $0x80] sm:$0xff]   ;;  %v3132_v43 = vld [vmem:[%s4108_s1 + $0x1b8] sm:$0xff]  }
   0xd   :  { %2763 = vmatpush3.bf16.msra.mxu1 %v3108_v11  ;;  %2742 = vmatprep.subr.bf16.mxu0 %v3109_v12  ;;  %v31_v32 = vld [vmem:[%s4107_s0] sm:$0xff]  ;;  %v32_v34 = vld [vmem:[%s4107_s0 + $0x8] sm:$0xff]  ;;  %v3133_v44 = vld [vmem:[%s4108_s1 + $0x170] sm:$0xff]  }
   0xe   :  { %2764 = vmatprep.subr.bf16.mxu1 %v3110_v13  ;;  %v39_v33 = vld [vmem:[%s4107_s0 + $0x40] sm:$0x33]  ;;  %v40_v37 = vld [vmem:[%s4107_s0 + $0x48] sm:$0x33]  ;;  %v3134_v45 = vld [vmem:[%s4108_s1 + $0x1f0] sm:$0xff]  }
   0xf   :  { %v2558_v35 = vcombine.low %v31_v32, %v39_v33  ;;  %v2559_v36 = vcombine.high %v31_v32, %v39_v33  ;;  %v2560_v38 = vcombine.low %v32_v34, %v40_v37  ;;  %v2561_v39 = vcombine.high %v32_v34, %v40_v37  ;;  %v3135_v46 = vld [vmem:[%s4108_s1 + $0x130] sm:$0xff]   ;;  %v3137_v48 = vld [vmem:[%s4108_s1 + $0x168] sm:$0xff]   ;;  %v3141_v52 = vld [vmem:[%s4108_s1 + $0x160] sm:$0xff]  }
  0x10   :  { %2743 = vmatpush3.bf16.msra.mxu0 %v3111_v14  ;;  %v3136_v47 = vld [vmem:[%s4108_s1 + $0x1b0] sm:$0xff]   ;;  %v3138_v49 = vld [vmem:[%s4108_s1 + $0x1e8] sm:$0xff]   ;;  %v3142_v53 = vld [vmem:[%s4108_s1 + $0x1e0] sm:$0xff]  }
  0x11   :  { %2765 = vmatpush3.bf16.msra.mxu1 %v3112_v15  ;;  %2744 = vmatprep.subr.bf16.mxu0 %v3113_v16  ;;  %v3139_v50 = vld [vmem:[%s4108_s1 + $0x128] sm:$0xff]   ;;  %v3143_v54 = vld [vmem:[%s4108_s1 + $0x120] sm:$0xff]   ;;  %v3145_v56 = vld [vmem:[%s4108_s1 + $0x158] sm:$0xff]  }
  0x12   :  { %2766 = vmatprep.subr.bf16.mxu1 %v3114_v17  ;;  %1190 = vmatprep.mubr.bf16.mxu0 %v2559_v36  ;;  %v3140_v51 = vld [vmem:[%s4108_s1 + $0x1a8] sm:$0xff]   ;;  %v3144_v55 = vld [vmem:[%s4108_s1 + $0x1a0] sm:$0xff]   ;;  %v3146_v57 = vld [vmem:[%s4108_s1 + $0x1d8] sm:$0xff]  }
  0x13   :  { %1231 = vmatprep.mubr.bf16.mxu1 %v2561_v39  ;;  %v3147_v58 = vld [vmem:[%s4108_s1 + $0x118] sm:$0xff]   ;;  %v3149_v60 = vld [vmem:[%s4108_s1 + $0x150] sm:$0xff]   ;;  %v3153_v0 = vld [vmem:[%s4108_s1 + $0x148] sm:$0xff]  }
  0x14   :  { %2745 = vmatpush3.bf16.msra.mxu0 %v3115_v18  ;;  %v3148_v59 = vld [vmem:[%s4108_s1 + $0x198] sm:$0xff]   ;;  %v3150_v61 = vld [vmem:[%s4108_s1 + $0x1d0] sm:$0xff]   ;;  %v3154_v1 = vld [vmem:[%s4108_s1 + $0x1c8] sm:$0xff]  }
  0x15   :  { %2767 = vmatpush3.bf16.msra.mxu1 %v3116_v19  ;;  %2746 = vmatprep.subr.bf16.mxu0 %v3117_v20  ;;  %v3151_v62 = vld [vmem:[%s4108_s1 + $0x110] sm:$0xff]   ;;  %v3155_v2 = vld [vmem:[%s4108_s1 + $0x108] sm:$0xff]   ;;  %v3157_v4 = vld [vmem:[%s4108_s1 + $0x140] sm:$0xff]  }
  0x16   :  { %2768 = vmatprep.subr.bf16.mxu1 %v3118_v21  ;;  %v3152_v63 = vld [vmem:[%s4108_s1 + $0x190] sm:$0xff]   ;;  %v3156_v3 = vld [vmem:[%s4108_s1 + $0x188] sm:$0xff]   ;;  %v3158_v5 = vld [vmem:[%s4108_s1 + $0x1c0] sm:$0xff]  }
  0x17   :  { %v3159_v6 = vld [vmem:[%s4108_s1 + $0x100] sm:$0xff]   ;;  %v33_v8 = vld [vmem:[%s4107_s0 + $0x10] sm:$0xff]  ;;  %v34_v12 = vld [vmem:[%s4107_s0 + $0x18] sm:$0xff] }
  0x18   :  { %2747 = vmatpush3.bf16.msra.mxu0 %v3119_v22  ;;  %v3160_v7 = vld [vmem:[%s4108_s1 + $0x180] sm:$0xff]   ;;  %v41_v9 = vld [vmem:[%s4107_s0 + $0x50] sm:$0x33]  ;;  %v42_v13 = vld [vmem:[%s4107_s0 + $0x58] sm:$0x33] }
  0x19   :  { %2769 = vmatpush3.bf16.msra.mxu1 %v3120_v23  ;;  %2748 = vmatprep.subr.bf16.mxu0 %v3121_v24  ;;  %v2562_v10 = vcombine.low %v33_v8, %v41_v9  ;;  %v2563_v11 = vcombine.high %v33_v8, %v41_v9  ;;  %v2564_v14 = vcombine.low %v34_v12, %v42_v13  ;;  %v3161_v16 = vld [vmem:[%s4108_s1 + $0x278] sm:$0xff]   ;;  %v3165_v20 = vld [vmem:[%s4108_s1 + $0x270] sm:$0xff]   ;;  %v3169_v24 = vld [vmem:[%s4108_s1 + $0x268] sm:$0xff]  }
  0x1a   :  { %2770 = vmatprep.subr.bf16.mxu1 %v3122_v25  ;;  %v2565_v15 = vcombine.high %v34_v12, %v42_v13  ;;  %v3162_v17 = vld [vmem:[%s4108_s1 + $0x2f8] sm:$0xff]   ;;  %v3166_v21 = vld [vmem:[%s4108_s1 + $0x2f0] sm:$0xff]   ;;  %v3170_v25 = vld [vmem:[%s4108_s1 + $0x2e8] sm:$0xff]  }
  0x1b   :  { %v3163_v18 = vld [vmem:[%s4108_s1 + $0x238] sm:$0xff]   ;;  %v3167_v22 = vld [vmem:[%s4108_s1 + $0x230] sm:$0xff]  }
  0x1c   :  { %2749 = vmatpush3.bf16.msra.mxu0 %v3123_v26  ;;  %v3164_v19 = vld [vmem:[%s4108_s1 + $0x2b8] sm:$0xff]   ;;  %v3168_v23 = vld [vmem:[%s4108_s1 + $0x2b0] sm:$0xff]   ;;  %v3171_v26 = vld [vmem:[%s4108_s1 + $0x228] sm:$0xff]  }
  0x1d   :  { %2771 = vmatpush3.bf16.msra.mxu1 %v3124_v27  ;;  %2750 = vmatprep.subr.bf16.mxu0 %v3125_v28  ;;  %v3172_v27 = vld [vmem:[%s4108_s1 + $0x2a8] sm:$0xff]   ;;  %v3173_v28 = vld [vmem:[%s4108_s1 + $0x260] sm:$0xff]   ;;  %v3177_v32 = vld [vmem:[%s4108_s1 + $0x258] sm:$0xff]  }
  0x1e   :  { %2772 = vmatprep.subr.bf16.mxu1 %v3126_v29  ;;  %v3174_v29 = vld [vmem:[%s4108_s1 + $0x2e0] sm:$0xff]   ;;  %v3178_v33 = vld [vmem:[%s4108_s1 + $0x2d8] sm:$0xff]   ;;  %v3181_v36 = vld [vmem:[%s4108_s1 + $0x250] sm:$0xff]  }
  0x1f   :  { %v3179_v34 = vld [vmem:[%s4108_s1 + $0x218] sm:$0xff]   ;;  %v3182_v37 = vld [vmem:[%s4108_s1 + $0x2d0] sm:$0xff]  }
  0x20   :  { %2751 = vmatpush3.bf16.msra.mxu0 %v3127_v30  ;;  %v3175_v30 = vld [vmem:[%s4108_s1 + $0x220] sm:$0xff]   ;;  %v3184_v39 = vld [vmem:[%s4108_s1 + $0x290] sm:$0xff]   ;;  %v3209_v8 = vld [vmem:[%s4108_s1 + $0x358] sm:$0xff]  }
  0x21   :  { %2773 = vmatpush3.bf16.msra.mxu1 %v3128_v31  ;;  %2780 = vmatprep.subr.bf16.mxu0 %v3129_v40  ;;  %v3176_v31 = vld [vmem:[%s4108_s1 + $0x2a0] sm:$0xff]   ;;  %v3185_v40 = vld [vmem:[%s4108_s1 + $0x248] sm:$0xff]   ;;  %v3210_v9 = vld [vmem:[%s4108_s1 + $0x3d8] sm:$0xff]  }
  0x22   :  { %2802 = vmatprep.subr.bf16.mxu1 %v3130_v41  ;;  %v3186_v41 = vld [vmem:[%s4108_s1 + $0x2c8] sm:$0xff]   ;;  %v3213_v12 = vld [vmem:[%s4108_s1 + $0x350] sm:$0xff]  }
  0x23   :  { %1191 = vmatmul.mubr.bf16.vlgmr.msra.gmra.mxu0 %v2558_v35  ;;  %v3180_v35 = vld [vmem:[%s4108_s1 + $0x298] sm:$0xff]   ;;  %v3214_v13 = vld [vmem:[%s4108_s1 + $0x3d0] sm:$0xff]  }
  0x24   :  { %1232 = vmatmul.mubr.bf16.vlgmr.msra.gmra.mxu1 %v2560_v38  ;;  %2781 = vmatpush3.bf16.msra.mxu0 %v3131_v42  ;;  %v3183_v38 = vld [vmem:[%s4108_s1 + $0x210] sm:$0xff]   ;;  %v3187_v42 = vld [vmem:[%s4108_s1 + $0x208] sm:$0xff]  }
  0x25   :  { %2803 = vmatpush3.bf16.msra.mxu1 %v3132_v43  ;;  %2782 = vmatprep.subr.bf16.mxu0 %v3133_v44  ;;  %v3188_v43 = vld [vmem:[%s4108_s1 + $0x288] sm:$0xff]   ;;  %v3189_v44 = vld [vmem:[%s4108_s1 + $0x240] sm:$0xff]  }
  0x26   :  { %2804 = vmatprep.subr.bf16.mxu1 %v3134_v45  ;;  %1272 = vmatprep.mubr.bf16.mxu0 %v2563_v11  ;;  %v3190_v45 = vld [vmem:[%s4108_s1 + $0x2c0] sm:$0xff]   ;;  %v3212_v11 = vld [vmem:[%s4108_s1 + $0x398] sm:$0xff]  }
  0x27   :  { %1313 = vmatprep.mubr.bf16.mxu1 %v2565_v15  ;;  %v3216_v15 = vld [vmem:[%s4108_s1 + $0x390] sm:$0xff]  }
  0x28   :  { %2783 = vmatpush3.bf16.msra.mxu0 %v3135_v46  ;;  %v3191_v46 = vld [vmem:[%s4108_s1 + $0x200] sm:$0xff]  }
  0x29   :  { %2805 = vmatpush3.bf16.msra.mxu1 %v3136_v47  ;;  %2784 = vmatprep.subr.bf16.mxu0 %v3137_v48  ;;  %v3192_v47 = vld [vmem:[%s4108_s1 + $0x280] sm:$0xff]  }
  0x2a   :  { %2806 = vmatprep.subr.bf16.mxu1 %v3138_v49  ;;  %v35_v48 = vld [vmem:[%s4107_s0 + $0x20] sm:$0xff] }
  0x2b   :  { %v43_v49 = vld [vmem:[%s4107_s0 + $0x60] sm:$0x33] }
  0x2c   :  { %2785 = vmatpush3.bf16.msra.mxu0 %v3139_v50  ;;  %v36_v50 = vld [vmem:[%s4107_s0 + $0x28] sm:$0xff] }
  0x2d   :  { %2807 = vmatpush3.bf16.msra.mxu1 %v3140_v51  ;;  %2786 = vmatprep.subr.bf16.mxu0 %v3141_v52  ;;  %v44_v51 = vld [vmem:[%s4107_s0 + $0x68] sm:$0x33]  ;;  %v2566_v52 = vcombine.low %v35_v48, %v43_v49 }
  0x2e   :  { %2808 = vmatprep.subr.bf16.mxu1 %v3142_v53  ;;  %v2567_v53 = vcombine.high %v35_v48, %v43_v49 }
  0x30   :  { %2787 = vmatpush3.bf16.msra.mxu0 %v3143_v54  ;;  %v2568_v54 = vcombine.low %v36_v50, %v44_v51 }
  0x31   :  { %2809 = vmatpush3.bf16.msra.mxu1 %v3144_v55  ;;  %2788 = vmatprep.subr.bf16.mxu0 %v3145_v56  ;;  %v2569_v55 = vcombine.high %v36_v50, %v44_v51  ;;  %v3193_v56 = vld [vmem:[%s4108_s1 + $0x378] sm:$0xff]  }
  0x32   :  { %2810 = vmatprep.subr.bf16.mxu1 %v3146_v57  ;;  %v3194_v57 = vld [vmem:[%s4108_s1 + $0x3f8] sm:$0xff]  }
  0x34   :  { %2789 = vmatpush3.bf16.msra.mxu0 %v3147_v58  ;;  %v3195_v58 = vld [vmem:[%s4108_s1 + $0x338] sm:$0xff]  }
  0x35   :  { %2811 = vmatpush3.bf16.msra.mxu1 %v3148_v59  ;;  %2790 = vmatprep.subr.bf16.mxu0 %v3149_v60  ;;  %v3196_v59 = vld [vmem:[%s4108_s1 + $0x3b8] sm:$0xff]   ;;  %v3197_v60 = vld [vmem:[%s4108_s1 + $0x370] sm:$0xff]  }
  0x36   :  { %2812 = vmatprep.subr.bf16.mxu1 %v3150_v61  ;;  %v3198_v61 = vld [vmem:[%s4108_s1 + $0x3f0] sm:$0xff]  }
  0x38   :  { %2791 = vmatpush3.bf16.msra.mxu0 %v3151_v62  ;;  %v3199_v62 = vld [vmem:[%s4108_s1 + $0x330] sm:$0xff]  }
  0x39   :  { %2813 = vmatpush3.bf16.msra.mxu1 %v3152_v63  ;;  %2792 = vmatprep.subr.bf16.mxu0 %v3153_v0  ;;  %v3200_v63 = vld [vmem:[%s4108_s1 + $0x3b0] sm:$0xff]   ;;  %v3201_v0 = vld [vmem:[%s4108_s1 + $0x368] sm:$0xff]  }
  0x3a   :  { %2814 = vmatprep.subr.bf16.mxu1 %v3154_v1  ;;  %v3202_v1 = vld [vmem:[%s4108_s1 + $0x3e8] sm:$0xff]  }
  0x3c   :  { %2793 = vmatpush3.bf16.msra.mxu0 %v3155_v2  ;;  %v3203_v2 = vld [vmem:[%s4108_s1 + $0x328] sm:$0xff]  }
  0x3d   :  { %2815 = vmatpush3.bf16.msra.mxu1 %v3156_v3  ;;  %2794 = vmatprep.subr.bf16.mxu0 %v3157_v4  ;;  %v3204_v3 = vld [vmem:[%s4108_s1 + $0x3a8] sm:$0xff]   ;;  %v3205_v4 = vld [vmem:[%s4108_s1 + $0x360] sm:$0xff]  }
  0x3e   :  { %2816 = vmatprep.subr.bf16.mxu1 %v3158_v5  ;;  %v3206_v5 = vld [vmem:[%s4108_s1 + $0x3e0] sm:$0xff]  }
  0x40   :  { %2795 = vmatpush3.bf16.msra.mxu0 %v3159_v6  ;;  %v3207_v6 = vld [vmem:[%s4108_s1 + $0x320] sm:$0xff]  }
  0x41   :  { %2817 = vmatpush3.bf16.msra.mxu1 %v3160_v7  ;;  %2824 = vmatprep.subr.bf16.mxu0 %v3161_v16  ;;  %v3208_v7 = vld [vmem:[%s4108_s1 + $0x3a0] sm:$0xff]   ;;  %v3217_v16 = vld [vmem:[%s4108_s1 + $0x348] sm:$0xff]  }
  0x42   :  { %2846 = vmatprep.subr.bf16.mxu1 %v3162_v17  ;;  %v3218_v17 = vld [vmem:[%s4108_s1 + $0x3c8] sm:$0xff]  }
  0x43   :  { %1273 = vmatmul.mubr.bf16.vlgmr.msra.gmra.mxu0 %v2562_v10  ;;  %v3211_v10 = vld [vmem:[%s4108_s1 + $0x318] sm:$0xff]  }
  0x44   :  { %1314 = vmatmul.mubr.bf16.vlgmr.msra.gmra.mxu1 %v2564_v14  ;;  %2825 = vmatpush3.bf16.msra.mxu0 %v3163_v18  ;;  %v3215_v14 = vld [vmem:[%s4108_s1 + $0x310] sm:$0xff]   ;;  %v3219_v18 = vld [vmem:[%s4108_s1 + $0x308] sm:$0xff]  }
  0x45   :  { %2847 = vmatpush3.bf16.msra.mxu1 %v3164_v19  ;;  %2826 = vmatprep.subr.bf16.mxu0 %v3165_v20  ;;  %v3220_v19 = vld [vmem:[%s4108_s1 + $0x388] sm:$0xff]   ;;  %v3221_v20 = vld [vmem:[%s4108_s1 + $0x340] sm:$0xff]  }
  0x46   :  { %2848 = vmatprep.subr.bf16.mxu1 %v3166_v21  ;;  %1354 = vmatprep.mubr.bf16.mxu0 %v2567_v53  ;;  %v3222_v21 = vld [vmem:[%s4108_s1 + $0x3c0] sm:$0xff]  }
  0x47   :  { %1395 = vmatprep.mubr.bf16.mxu1 %v2569_v55 }
  0x48   :  { %2827 = vmatpush3.bf16.msra.mxu0 %v3167_v22  ;;  %v3223_v22 = vld [vmem:[%s4108_s1 + $0x300] sm:$0xff]  }
  0x49   :  { %2849 = vmatpush3.bf16.msra.mxu1 %v3168_v23  ;;  %2828 = vmatprep.subr.bf16.mxu0 %v3169_v24  ;;  %v3224_v23 = vld [vmem:[%s4108_s1 + $0x380] sm:$0xff]   ;;  %v37_v24 = vld [vmem:[%s4107_s0 + $0x30] sm:$0xff] }
  0x4a   :  { %2850 = vmatprep.subr.bf16.mxu1 %v3170_v25  ;;  %v45_v25 = vld [vmem:[%s4107_s0 + $0x70] sm:$0x33] }
  0x4c   :  { %2829 = vmatpush3.bf16.msra.mxu0 %v3171_v26  ;;  %v38_v26 = vld [vmem:[%s4107_s0 + $0x38] sm:$0xff] }
  0x4d   :  { %2851 = vmatpush3.bf16.msra.mxu1 %v3172_v27  ;;  %2830 = vmatprep.subr.bf16.mxu0 %v3173_v28  ;;  %v2570_v27 = vcombine.low %v37_v24, %v45_v25  ;;  %v2571_v28 = vcombine.high %v37_v24, %v45_v25 }
  0x4e   :  { %2852 = vmatprep.subr.bf16.mxu1 %v3174_v29  ;;  %v46_v29 = vld [vmem:[%s4107_s0 + $0x78] sm:$0x33] }
  0x50   :  { %2831 = vmatpush3.bf16.msra.mxu0 %v3175_v30  ;;  %v2572_v30 = vcombine.low %v38_v26, %v46_v29 }
  0x51   :  { %2853 = vmatpush3.bf16.msra.mxu1 %v3176_v31  ;;  %2832 = vmatprep.subr.bf16.mxu0 %v3177_v32  ;;  %v2573_v31 = vcombine.high %v38_v26, %v46_v29  ;;  %v3351_v32 = vmov 0.0  }
  0x52   :  { %2854 = vmatprep.subr.bf16.mxu1 %v3178_v33  ;;  %v3838_v33 = vld [vmem:[%s4109_s2 + $0x8] sm:$0xff]  }
  0x54   :  { %2833 = vmatpush3.bf16.msra.mxu0 %v3179_v34  ;;  %v3844_v34 = vld [vmem:[%s4109_s2] sm:$0xff]  }
  0x55   :  { %2855 = vmatpush3.bf16.msra.mxu1 %v3180_v35  ;;  %2834 = vmatprep.subr.bf16.mxu0 %v3181_v36 }
  0x56   :  { %2856 = vmatprep.subr.bf16.mxu1 %v3182_v37 }
  0x58   :  { %2835 = vmatpush3.bf16.msra.mxu0 %v3183_v38 }
  0x59   :  { %2857 = vmatpush3.bf16.msra.mxu1 %v3184_v39  ;;  %2836 = vmatprep.subr.bf16.mxu0 %v3185_v40 }
  0x5a   :  { %2858 = vmatprep.subr.bf16.mxu1 %v3186_v41 }
  0x5c   :  { %2837 = vmatpush3.bf16.msra.mxu0 %v3187_v42 }
  0x5d   :  { %2859 = vmatpush3.bf16.msra.mxu1 %v3188_v43  ;;  %2838 = vmatprep.subr.bf16.mxu0 %v3189_v44 }
  0x5e   :  { %2860 = vmatprep.subr.bf16.mxu1 %v3190_v45 }
  0x60   :  { %2839 = vmatpush3.bf16.msra.mxu0 %v3191_v46 }
  0x61   :  { %2861 = vmatpush3.bf16.msra.mxu1 %v3192_v47  ;;  %2868 = vmatprep.subr.bf16.mxu0 %v3193_v56 }
  0x62   :  { %2890 = vmatprep.subr.bf16.mxu1 %v3194_v57 }
  0x63   :  { %1355 = vmatmul.mubr.bf16.vlgmr.msra.gmra.mxu0 %v2566_v52 }
  0x64   :  { %1396 = vmatmul.mubr.bf16.vlgmr.msra.gmra.mxu1 %v2568_v54  ;;  %2869 = vmatpush3.bf16.msra.mxu0 %v3195_v58 }
  0x65   :  { %2891 = vmatpush3.bf16.msra.mxu1 %v3196_v59  ;;  %2870 = vmatprep.subr.bf16.mxu0 %v3197_v60 }
  0x66   :  { %2892 = vmatprep.subr.bf16.mxu1 %v3198_v61  ;;  %1436 = vmatprep.mubr.bf16.mxu0 %v2571_v28 }
  0x67   :  { %1477 = vmatprep.mubr.bf16.mxu1 %v2573_v31 }
  0x68   :  { %2871 = vmatpush3.bf16.msra.mxu0 %v3199_v62 }
  0x69   :  { %2893 = vmatpush3.bf16.msra.mxu1 %v3200_v63  ;;  %2872 = vmatprep.subr.bf16.mxu0 %v3201_v0 }
  0x6a   :  { %2894 = vmatprep.subr.bf16.mxu1 %v3202_v1 }
  0x6c   :  { %2873 = vmatpush3.bf16.msra.mxu0 %v3203_v2 }
  0x6d   :  { %2895 = vmatpush3.bf16.msra.mxu1 %v3204_v3  ;;  %2874 = vmatprep.subr.bf16.mxu0 %v3205_v4 }
  0x6e   :  { %2896 = vmatprep.subr.bf16.mxu1 %v3206_v5 }
  0x70   :  { %2875 = vmatpush3.bf16.msra.mxu0 %v3207_v6 }
  0x71   :  { %2897 = vmatpush3.bf16.msra.mxu1 %v3208_v7  ;;  %2876 = vmatprep.subr.bf16.mxu0 %v3209_v8 }
  0x72   :  { %2898 = vmatprep.subr.bf16.mxu1 %v3210_v9 }
  0x74   :  { %2877 = vmatpush3.bf16.msra.mxu0 %v3211_v10 }
  0x75   :  { %2899 = vmatpush3.bf16.msra.mxu1 %v3212_v11  ;;  %2878 = vmatprep.subr.bf16.mxu0 %v3213_v12 }
  0x76   :  { %2900 = vmatprep.subr.bf16.mxu1 %v3214_v13 }
  0x78   :  { %2879 = vmatpush3.bf16.msra.mxu0 %v3215_v14 }
  0x79   :  { %2901 = vmatpush3.bf16.msra.mxu1 %v3216_v15  ;;  %2880 = vmatprep.subr.bf16.mxu0 %v3217_v16 }
  0x7a   :  { %2902 = vmatprep.subr.bf16.mxu1 %v3218_v17 }
  0x7c   :  { %2881 = vmatpush3.bf16.msra.mxu0 %v3219_v18 }
  0x7d   :  { %2903 = vmatpush3.bf16.msra.mxu1 %v3220_v19  ;;  %2882 = vmatprep.subr.bf16.mxu0 %v3221_v20 }
  0x7e   :  { %2904 = vmatprep.subr.bf16.mxu1 %v3222_v21 }
  0x80   :  { %2883 = vmatpush3.bf16.msra.mxu0 %v3223_v22 }
  0x81   :  { %2905 = vmatpush3.bf16.msra.mxu1 %v3224_v23  ;;  %2963 = vmatprep.subr.bf16.mxu0 %v3351_v32 }
  0x82   :  { %2971 = vmatprep.subr.bf16.mxu1 %v3351_v32 }
  0x83   :  { %1437 = vmatmul.mubr.bf16.vlgmr.msra.gmra.mxu0 %v2570_v27 }
  0x84   :  { %1478 = vmatmul.mubr.bf16.vlgmr.msra.gmra.mxu1 %v2572_v30  ;;  %2964 = vmatpush3.bf16.msra.mxu0 %v3838_v33 }
  0x85   :  { %2965 = vmatprep.subr.bf16.mxu0 %v3351_v32  ;;  %2967 = vmatprep.mubr.msk.bf16.mxu0 %vm3352_vm0, %v3351_v32 }
  0x86   :  { %2979 = vmatprep.mubr.msk.bf16.mxu1 %vm3352_vm0, %v3351_v32 }
  0x87   :  { %13 = vsyncpa [#allocation3], 0  ;;  %v3353_v35 = vmov 0   ;;  %v2557_v45 = vld [vmem:[%s4110_s3] ss:$0 sm:$0xff]  ;;  %s3354_s3 = smov 64  }
  0x88   :  { %2966 = vmatpush3.bf16.msra.mxu0 %v3844_v34  ;;  %s3355_s10 = smov 32   ;;  %vm1511_vm1 = vcmask 261120   ;;  %vm1616_vm2 = vcmask 523264   ;;  %s3356_s25 = smov [#allocation2]   ;;  %vm2541_vm3 = vcmask 74752  }
  0x89   :  { %2983 = vmatprep.subr.bf16.mxu0 %v3351_v32 }
  0x8b   :  { %2968 = vmatmul.mubr.bf16.vlgmr.msra.gmra.mxu0 %v3353_v35 }
  0x8c   :  { %2984 = vmatpush3.bf16.msra.mxu0 %v3838_v33  ;;  %2987 = vmatprep.mubr.msk.bf16.mxu0 %vm3352_vm0, %v3351_v32 }
  0x8d   :  { %2985 = vmatprep.subr.bf16.mxu0 %v3351_v32 }
  0x90   :  { %2986 = vmatpush3.bf16.msra.mxu0 %v3844_v34 }
  0x91   :  { %2991 = vmatprep.subr.bf16.mxu0 %v3351_v32 }
  0xe3   :  { %v2752_v36 = vpop.f32.mrf.mxu0 }
  0xe4   :  { %v2774_v37 = vpop.f32.mrf.mxu1 }
  0xe5   :  { %v2753_v38 = vpop.f32.mrf.mxu0 }
  0xe6   :  { %v2775_v39 = vpop.f32.mrf.mxu1  ;;  %v2754_v9 = vadd.f32 %v2753_v38, %v2752_v36 }
  0xe7   :  { %v2755_v40 = vpop.f32.mrf.mxu0  ;;  %v2776_v11 = vadd.f32 %v2775_v39, %v2774_v37 }
  0xe8   :  { %v2777_v41 = vpop.f32.mrf.mxu1  ;;  %v1193_v10 = vadd.f32 %v2754_v9, %v2557_v45 }
  0xe9   :  { %v2756_v42 = vpop.f32.mrf.mxu0 }
  0xea   :  { %v2757_v43 = vadd.f32 %v2756_v42, %v2755_v40  ;;  %v2778_v44 = vpop.f32.mrf.mxu1  ;;  %v1234_v13 = vadd.f32 %v2776_v11, %v1193_v10 }
  0xeb   :  { %v2779_v46 = vadd.f32 %v2778_v44, %v2777_v41 }
  0xec   :  { %v1196_v47 = vadd.f32 %v2757_v43, %v2557_v45 }
  0xee   :  { %v1237_v48 = vadd.f32 %v2779_v46, %v1196_v47 }
 0x103   :  { %v2796_v49 = vpop.f32.mrf.mxu0 }
 0x104   :  { %v2818_v50 = vpop.f32.mrf.mxu1 }
 0x105   :  { %v2797_v51 = vpop.f32.mrf.mxu0 }
 0x106   :  { %v2819_v52 = vpop.f32.mrf.mxu1  ;;  %v2798_v12 = vadd.f32 %v2797_v51, %v2796_v49 }
 0x107   :  { %v2799_v53 = vpop.f32.mrf.mxu0  ;;  %v2820_v15 = vadd.f32 %v2819_v52, %v2818_v50 }
 0x108   :  { %v2821_v54 = vpop.f32.mrf.mxu1  ;;  %v1275_v14 = vadd.f32 %v2798_v12, %v1234_v13 }
 0x109   :  { %v2800_v55 = vpop.f32.mrf.mxu0 }
 0x10a   :  { %v2801_v56 = vadd.f32 %v2800_v55, %v2799_v53  ;;  %v2822_v57 = vpop.f32.mrf.mxu1  ;;  %v1316_v17 = vadd.f32 %v2820_v15, %v1275_v14  ;;  %v3876_v55 = vld [vmem:[%s4111_s4 + $0x18] sm:$0xff]  }
 0x10b   :  { %v2823_v58 = vadd.f32 %v2822_v57, %v2821_v54  ;;  %2972 = vmatpush3.bf16.msra.mxu1 %v3876_v55  ;;  %v3889_v57 = vld [vmem:[%s4111_s4 + $0x8] sm:$0xff]  }
 0x10c   :  { %v1278_v59 = vadd.f32 %v2801_v56, %v1237_v48  ;;  %v3882_v56 = vld [vmem:[%s4111_s4 + $0x10] sm:$0xff]   ;;  %2973 = vmatprep.subr.bf16.mxu1 %v3351_v32 }
 0x10e   :  { %v1319_v60 = vadd.f32 %v2823_v58, %v1278_v59  ;;  %v3898_v59 = vld [vmem:[%s4111_s4] sm:$0xff]  }
 0x10f   :  { %2974 = vmatpush3.bf16.msra.mxu1 %v3882_v56 }
 0x110   :  { %2975 = vmatprep.subr.bf16.mxu1 %v3351_v32 }
 0x113   :  { %2976 = vmatpush3.bf16.msra.mxu1 %v3889_v57 }
 0x114   :  { %2977 = vmatprep.subr.bf16.mxu1 %v3351_v32 }
 0x117   :  { %2978 = vmatpush3.bf16.msra.mxu1 %v3898_v59 }
 0x118   :  { %3003 = vmatprep.subr.bf16.mxu1 %v3351_v32 }
 0x123   :  { %v2840_v61 = vpop.f32.mrf.mxu0 }
 0x124   :  { %v2862_v62 = vpop.f32.mrf.mxu1 }
 0x125   :  { %v2841_v63 = vpop.f32.mrf.mxu0 }
 0x126   :  { %v2863_v0 = vpop.f32.mrf.mxu1  ;;  %v2842_v16 = vadd.f32 %v2841_v63, %v2840_v61 }
 0x127   :  { %v2843_v1 = vpop.f32.mrf.mxu0  ;;  %v2864_v19 = vadd.f32 %v2863_v0, %v2862_v62 }
 0x128   :  { %v2865_v2 = vpop.f32.mrf.mxu1  ;;  %v1357_v18 = vadd.f32 %v2842_v16, %v1316_v17 }
 0x129   :  { %v2844_v3 = vpop.f32.mrf.mxu0 }
 0x12a   :  { %v2866_v4 = vpop.f32.mrf.mxu1  ;;  %v2845_v5 = vadd.f32 %v2844_v3, %v2843_v1  ;;  %v1398_v23 = vadd.f32 %v2864_v19, %v1357_v18  ;;  %v3926_v3 = vld [vmem:[%s4112_s5] ss:$0 sm:$0xff] }
 0x12b   :  { %v2867_v6 = vadd.f32 %v2866_v4, %v2865_v2 }
 0x12c   :  { %v1360_v7 = vadd.f32 %v2845_v5, %v1319_v60 }
 0x12e   :  { %v1401_v8 = vadd.f32 %v2867_v6, %v1360_v7 }
 0x143   :  { %v2884_v20 = vpop.f32.mrf.mxu0 }
 0x144   :  { %v2906_v21 = vpop.f32.mrf.mxu1 }
 0x145   :  { %v2885_v22 = vpop.f32.mrf.mxu0 }
 0x146   :  { %v2886_v24 = vadd.f32 %v2885_v22, %v2884_v20  ;;  %v2907_v25 = vpop.f32.mrf.mxu1 }
 0x147   :  { %v2887_v26 = vpop.f32.mrf.mxu0  ;;  %v2908_v28 = vadd.f32 %v2907_v25, %v2906_v21 }
 0x148   :  { %v1439_v27 = vadd.f32 %v2886_v24, %v1398_v23  ;;  %v2909_v29 = vpop.f32.mrf.mxu1 }
 0x149   :  { %v2888_v30 = vpop.f32.mrf.mxu0 }
 0x14a   :  { %v3863_v31 = vadd.f32 %v2908_v28, %v1439_v27  ;;  %v2889_v35 = vadd.f32 %v2888_v30, %v2887_v26  ;;  %v2910_v36 = vpop.f32.mrf.mxu1 }
 0x14b   :  { %v1549_v37 = vpop.f32.mrf.mxu0  ;;  %v2911_v39 = vadd.f32 %v2910_v36, %v2909_v29 }
 0x14c   :  { %v1442_v38 = vadd.f32 %v2889_v35, %v1401_v8  ;;  %v1555_v40 = vadd.f32 %v1549_v37, %v3863_v31 }
 0x14d   :  { %v2969_v41 = vpop.f32.mrf.mxu0 }
 0x14e   :  { %3233 = vtanh.f32 %v1555_v40  ;;  %v3866_v42 = vadd.f32 %v2911_v39, %v1442_v38  ;;  %v2704_v46 = vmul.f32 -1.442695, %v1555_v40 }
 0x14f   :  { %v1552_v43 = vpop.f32.mrf.mxu0 }
 0x150   :  { %3235 = vpow2.f32 %v2704_v46 }
 0x151   :  { %v2970_v44 = vpop.f32.mrf.mxu0 }
 0x15b   :  { %v3234_v45 = vpop.eup %3233 }
 0x15c   :  { %1565 = vrot.lane.b32.xlu0 %v3234_v45, %s3354_s3 }
 0x15d   :  { %v3236_v47 = vpop.eup %3235 }
 0x15e   :  { %v1559_v48 = vadd.f32 1.0, %v3236_v47 }
 0x160   :  { %3237 = vrcp.f32 %v1559_v48 }
 0x16d   :  { %v3238_v49 = vpop.eup %3237 }
 0x16e   :  { %v1563_v52 = vmul.f32 0.0, %v3238_v49 }
 0x1ce   :  { %v1566_v50 = vpop.permute.xlu0 %1565 }
 0x1cf   :  { %v1568_v51 = vmul.f32 %v3238_v49, %v1566_v50 }
 0x1d1   :  { %1570 = vrot.lane.b32.xlu0 %v1568_v51, %s3355_s10 }
 0x243   :  { %v1571_v53 = vpop.permute.xlu0 %1570 }
 0x244   :  { %v3870_v54 = vadd.f32 %v1571_v53, %v1563_v52 }
 0x246   :  { %3239 = vtanh.f32 %v3870_v54  ;;  %v1743_v29 = vrot.slane %v3870_v54, 6 }
 0x253   :  { %v3240_v58 = vpop.eup %3239 }
 0x254   :  { %1576 = vrot.lane.b32.xlu1 %v3240_v58, %s3354_s3 }
 0x2c6   :  { %v1577_v60 = vpop.permute.xlu1 %1576 }
 0x2c7   :  { %v1579_v61 = vmul.f32 %v3238_v49, %v1577_v60 }
 0x2c9   :  { %v1684_v62 = vpack.c.bf16 %v1579_v61, %v1579_v61  ;;  %1581 = vrot.lane.b32.xlu1 %v1579_v61, %s3355_s10 }
 0x2cb   :  { %1686 = vrot.lane.b32.xlu0 %v1684_v62, %s3355_s10 }
 0x33b   :  { %v1582_v63 = vpop.permute.xlu1 %1581 }
 0x33c   :  { %v1584_v0 = vsel %vm1511_vm1, %v1582_v63, 0.0 }
 0x33d   :  { %v1585_v1 = vpack.c.bf16 %v1584_v0, %v1584_v0  ;;  %v1687_v2 = vpop.permute.xlu0 %1686 }
 0x33e   :  { %2988 = vmatmul.mubr.msk.bf16.vlgmr.msra.gmra.mxu0 %vm1511_vm1, %v1687_v2 }
 0x33f   :  { %2980 = vmatmul.mubr.msk.bf16.vlgmr.msra.gmra.mxu1 %vm1616_vm2, %v1585_v1  ;;  %2992 = vmatpush3.bf16.msra.mxu0 %v3876_v55 }
 0x340   :  { %2993 = vmatprep.subr.bf16.mxu0 %v3351_v32  ;;  %3004 = vmatpush3.bf16.msra.mxu1 %v3838_v33 }
 0x341   :  { %3005 = vmatprep.subr.bf16.mxu1 %v3351_v32  ;;  %3007 = vmatprep.mubr.msk.bf16.mxu1 %vm3352_vm0, %v3351_v32 }
 0x342   :  { %2999 = vmatprep.mubr.msk.bf16.mxu0 %vm3352_vm0, %v3351_v32 }
 0x343   :  { %2994 = vmatpush3.bf16.msra.mxu0 %v3882_v56 }
 0x344   :  { %2995 = vmatprep.subr.bf16.mxu0 %v3351_v32  ;;  %3006 = vmatpush3.bf16.msra.mxu1 %v3844_v34 }
 0x345   :  { %3011 = vmatprep.subr.bf16.mxu1 %v3351_v32 }
 0x347   :  { %2996 = vmatpush3.bf16.msra.mxu0 %v3889_v57 }
 0x348   :  { %2997 = vmatprep.subr.bf16.mxu0 %v3351_v32 }
 0x34b   :  { %2998 = vmatpush3.bf16.msra.mxu0 %v3898_v59 }
 0x34c   :  { %3023 = vmatprep.subr.bf16.mxu0 %v3351_v32 }
 0x3fe   :  { %v1725_v4 = vpop.f32.mrf.mxu0 }
 0x3ff   :  { %v1732_v5 = vrot.slane %v1725_v4, 6  ;;  %v1654_v6 = vpop.f32.mrf.mxu1 }
 0x400   :  { %v1655_v7 = vadd.f32 %v3926_v3, %v1654_v6  ;;  %v2989_v8 = vpop.f32.mrf.mxu0 }
 0x401   :  { %v1734_v9 = vadd.f32 %v1732_v5, %v3863_v31  ;;  %v2981_v10 = vpop.f32.mrf.mxu1 }
 0x402   :  { %3241 = vtanh.f32 %v1655_v7  ;;  %v1728_v11 = vpop.f32.mrf.mxu0  ;;  %v2711_v17 = vmul.f32 -1.442695, %v1655_v7 }
 0x403   :  { %3243 = vtanh.f32 %v1734_v9  ;;  %v1657_v12 = vpop.f32.mrf.mxu1  ;;  %v2713_v18 = vmul.f32 -1.442695, %v1734_v9 }
 0x404   :  { %v2990_v13 = vpop.f32.mrf.mxu0  ;;  %3245 = vpow2.f32 %v2711_v17 }
 0x405   :  { %v2982_v14 = vpop.f32.mrf.mxu1  ;;  %3247 = vpow2.f32 %v2713_v18 }
 0x40f   :  { %v3242_v15 = vpop.eup %3241 }
 0x410   :  { %v3244_v16 = vpop.eup %3243  ;;  %1669 = vrot.lane.b32.xlu1 %v3242_v15, %s3354_s3 }
 0x411   :  { %1747 = vrot.lane.b32.xlu0 %v3244_v16, %s3354_s3  ;;  %v3246_v19 = vpop.eup %3245 }
 0x412   :  { %v3248_v20 = vpop.eup %3247  ;;  %v1663_v21 = vadd.f32 1.0, %v3246_v19 }
 0x413   :  { %v1738_v22 = vadd.f32 1.0, %v3248_v20 }
 0x414   :  { %3249 = vrcp.f32 %v1663_v21 }
 0x415   :  { %3251 = vrcp.f32 %v1738_v22 }
 0x421   :  { %v3250_v23 = vpop.eup %3249 }
 0x422   :  { %v3252_v25 = vpop.eup %3251  ;;  %v1667_v30 = vmul.f32 0.0, %v3250_v23 }
 0x423   :  { %v1745_v36 = vmul.f32 %v3252_v25, %v1743_v29 }
 0x482   :  { %v1670_v24 = vpop.permute.xlu1 %1669 }
 0x483   :  { %v1672_v26 = vmul.f32 %v3250_v23, %v1670_v24  ;;  %v1748_v27 = vpop.permute.xlu0 %1747 }
 0x484   :  { %v1750_v28 = vmul.f32 %v3252_v25, %v1748_v27 }
 0x485   :  { %1674 = vrot.lane.b32.xlu1 %v1672_v26, %s3355_s10 }
 0x486   :  { %1752 = vrot.lane.b32.xlu0 %v1750_v28, %s3355_s10 }
 0x4f7   :  { %v1675_v35 = vpop.permute.xlu1 %1674 }
 0x4f8   :  { %v3935_v37 = vadd.f32 %v1675_v35, %v1667_v30  ;;  %v1753_v38 = vpop.permute.xlu0 %1752 }
 0x4f9   :  { %v3937_v39 = vadd.f32 %v1753_v38, %v1745_v36 }
 0x4fa   :  { %3253 = vtanh.f32 %v3935_v37 }
 0x4fb   :  { %3255 = vtanh.f32 %v3937_v39  ;;  %v1902_v22 = vrot.slane %v3937_v39, 6 }
 0x507   :  { %v3254_v40 = vpop.eup %3253 }
 0x508   :  { %v3256_v41 = vpop.eup %3255  ;;  %1680 = vrot.lane.b32.xlu1 %v3254_v40, %s3354_s3 }
 0x509   :  { %1758 = vrot.lane.b32.xlu0 %v3256_v41, %s3354_s3 }
 0x57a   :  { %v1681_v43 = vpop.permute.xlu1 %1680 }
 0x57b   :  { %v1683_v44 = vmul.f32 %v3250_v23, %v1681_v43  ;;  %v1759_v45 = vpop.permute.xlu0 %1758 }
 0x57c   :  { %v1761_v46 = vmul.f32 %v3252_v25, %v1759_v45 }
 0x57d   :  { %v1767_v47 = vrot.slane %v1683_v44, 6 }
 0x57e   :  { %v1842_v48 = vpack.c.bf16 %v1761_v46, %v1761_v46  ;;  %1763 = vrot.lane.b32.xlu1 %v1761_v46, %s3355_s10 }
 0x57f   :  { %1768 = vrot.lane.b32.xlu0 %v1767_v47, %s3354_s3 }
 0x580   :  { %v1844_v49 = vrot.slane %v1842_v48, 1 }
 0x582   :  { %1845 = vrot.lane.b32.xlu1 %v1844_v49, %s3355_s10 }
 0x5f0   :  { %v1764_v50 = vpop.permute.xlu1 %1763 }
 0x5f1   :  { %v1769_v51 = vpop.permute.xlu0 %1768 }
 0x5f2   :  { %v1771_v52 = vsel %vm1511_vm1, %v1764_v50, %v1769_v51 }
 0x5f3   :  { %v1772_v53 = vpack.c.bf16 %v1771_v52, %v1771_v52 }
 0x5f4   :  { %v1846_v54 = vpop.permute.xlu1 %1845 }
 0x5f5   :  { %v1774_v58 = vrot.slane %v1772_v53, 1  ;;  %3008 = vmatmul.mubr.msk.bf16.vlgmr.msra.gmra.mxu1 %vm1511_vm1, %v1846_v54 }
 0x5f6   :  { %3012 = vmatpush3.bf16.msra.mxu1 %v3876_v55  ;;  %3019 = vmatprep.mubr.msk.bf16.mxu1 %vm3352_vm0, %v3351_v32 }
 0x5f7   :  { %3000 = vmatmul.mubr.msk.bf16.vlgmr.msra.gmra.mxu0 %vm1616_vm2, %v1774_v58  ;;  %3013 = vmatprep.subr.bf16.mxu1 %v3351_v32 }
 0x5f8   :  { %3024 = vmatpush3.bf16.msra.mxu0 %v3838_v33  ;;  %3027 = vmatprep.mubr.msk.bf16.mxu0 %vm3352_vm0, %v3351_v32 }
 0x5f9   :  { %3025 = vmatprep.subr.bf16.mxu0 %v3351_v32 }
 0x5fa   :  { %3014 = vmatpush3.bf16.msra.mxu1 %v3882_v56 }
 0x5fb   :  { %3015 = vmatprep.subr.bf16.mxu1 %v3351_v32 }
 0x5fc   :  { %3026 = vmatpush3.bf16.msra.mxu0 %v3844_v34 }
 0x5fd   :  { %3031 = vmatprep.subr.bf16.mxu0 %v3351_v32 }
 0x5fe   :  { %3016 = vmatpush3.bf16.msra.mxu1 %v3889_v57 }
 0x5ff   :  { %3017 = vmatprep.subr.bf16.mxu1 %v3351_v32 }
 0x602   :  { %3018 = vmatpush3.bf16.msra.mxu1 %v3898_v59 }
 0x603   :  { %3043 = vmatprep.subr.bf16.mxu1 %v3351_v32 }
 0x6b5   :  { %v1884_v60 = vpop.f32.mrf.mxu1 }
 0x6b6   :  { %v1891_v61 = vrot.slane %v1884_v60, 4 }
 0x6b7   :  { %v1812_v62 = vpop.f32.mrf.mxu0  ;;  %v3009_v63 = vpop.f32.mrf.mxu1 }
 0x6b8   :  { %v1893_v0 = vadd.f32 %v1891_v61, %v3863_v31  ;;  %v1813_v1 = vadd.f32 %v3926_v3, %v1812_v62 }
 0x6b9   :  { %v3001_v2 = vpop.f32.mrf.mxu0  ;;  %v1887_v4 = vpop.f32.mrf.mxu1 }
 0x6ba   :  { %3257 = vtanh.f32 %v1893_v0  ;;  %v2717_v10 = vmul.f32 -1.442695, %v1893_v0  ;;  %v2715_v11 = vmul.f32 -1.442695, %v1813_v1 }
 0x6bb   :  { %3259 = vtanh.f32 %v1813_v1  ;;  %v1815_v5 = vpop.f32.mrf.mxu0  ;;  %v3010_v6 = vpop.f32.mrf.mxu1 }
 0x6bc   :  { %3261 = vpow2.f32 %v2717_v10 }
 0x6bd   :  { %v3002_v7 = vpop.f32.mrf.mxu0  ;;  %3263 = vpow2.f32 %v2715_v11 }
 0x6c7   :  { %v3258_v8 = vpop.eup %3257 }
 0x6c8   :  { %v3260_v9 = vpop.eup %3259  ;;  %1906 = vrot.lane.b32.xlu1 %v3258_v8, %s3354_s3 }
 0x6c9   :  { %1827 = vrot.lane.b32.xlu0 %v3260_v9, %s3354_s3  ;;  %v3262_v12 = vpop.eup %3261 }
 0x6ca   :  { %v3264_v13 = vpop.eup %3263  ;;  %v1897_v14 = vadd.f32 1.0, %v3262_v12 }
 0x6cb   :  { %v1821_v15 = vadd.f32 1.0, %v3264_v13 }
 0x6cc   :  { %3265 = vrcp.f32 %v1897_v14 }
 0x6cd   :  { %3267 = vrcp.f32 %v1821_v15 }
 0x6d9   :  { %v3266_v16 = vpop.eup %3265 }
 0x6da   :  { %v3268_v18 = vpop.eup %3267  ;;  %v1904_v23 = vmul.f32 %v3266_v16, %v1902_v22 }
 0x6db   :  { %v1825_v25 = vmul.f32 %v3268_v18, %v3935_v37 }
 0x73a   :  { %v1907_v17 = vpop.permute.xlu1 %1906 }
 0x73b   :  { %v1909_v19 = vmul.f32 %v3266_v16, %v1907_v17  ;;  %v1828_v20 = vpop.permute.xlu0 %1827 }
 0x73c   :  { %v1830_v21 = vmul.f32 %v3268_v18, %v1828_v20 }
 0x73d   :  { %1911 = vrot.lane.b32.xlu1 %v1909_v19, %s3355_s10 }
 0x73e   :  { %1832 = vrot.lane.b32.xlu0 %v1830_v21, %s3355_s10 }
 0x7af   :  { %v1912_v24 = vpop.permute.xlu1 %1911 }
 0x7b0   :  { %v3973_v26 = vadd.f32 %v1912_v24, %v1904_v23  ;;  %v1833_v27 = vpop.permute.xlu0 %1832 }
 0x7b1   :  { %v3975_v28 = vadd.f32 %v1833_v27, %v1825_v25 }
 0x7b2   :  { %3269 = vtanh.f32 %v3973_v26  ;;  %v2061_v14 = vrot.slane %v3973_v26, 6 }
 0x7b3   :  { %3271 = vtanh.f32 %v3975_v28 }
 0x7bf   :  { %v3270_v29 = vpop.eup %3269 }
 0x7c0   :  { %v3272_v30 = vpop.eup %3271  ;;  %1917 = vrot.lane.b32.xlu1 %v3270_v29, %s3354_s3 }
 0x7c1   :  { %1838 = vrot.lane.b32.xlu0 %v3272_v30, %s3354_s3 }
 0x832   :  { %v1918_v35 = vpop.permute.xlu1 %1917 }
 0x833   :  { %v1920_v36 = vmul.f32 %v3266_v16, %v1918_v35  ;;  %v1839_v38 = vpop.permute.xlu0 %1838 }
 0x834   :  { %v1841_v39 = vmul.f32 %v3268_v18, %v1839_v38 }
 0x835   :  { %v2001_v37 = vpack.c.bf16 %v1920_v36, %v1920_v36  ;;  %1922 = vrot.lane.b32.xlu0 %v1920_v36, %s3355_s10 }
 0x836   :  { %v1926_v40 = vrot.slane %v1841_v39, 4 }
 0x837   :  { %v2003_v41 = vrot.slane %v2001_v37, 2 }
 0x838   :  { %1927 = vrot.lane.b32.xlu1 %v1926_v40, %s3354_s3 }
 0x839   :  { %2004 = vrot.lane.b32.xlu0 %v2003_v41, %s3355_s10 }
 0x8a7   :  { %v1923_v43 = vpop.permute.xlu0 %1922 }
 0x8aa   :  { %v1928_v44 = vpop.permute.xlu1 %1927 }
 0x8ab   :  { %v1930_v45 = vsel %vm1511_vm1, %v1923_v43, %v1928_v44  ;;  %v2005_v46 = vpop.permute.xlu0 %2004 }
 0x8ac   :  { %v1931_v47 = vpack.c.bf16 %v1930_v45, %v1930_v45  ;;  %3028 = vmatmul.mubr.msk.bf16.vlgmr.msra.gmra.mxu0 %vm1511_vm1, %v2005_v46 }
 0x8ad   :  { %3032 = vmatpush3.bf16.msra.mxu0 %v3876_v55  ;;  %3039 = vmatprep.mubr.msk.bf16.mxu0 %vm3352_vm0, %v3351_v32 }
 0x8ae   :  { %v1933_v48 = vrot.slane %v1931_v47, 2  ;;  %3033 = vmatprep.subr.bf16.mxu0 %v3351_v32 }
 0x8b0   :  { %3020 = vmatmul.mubr.msk.bf16.vlgmr.msra.gmra.mxu1 %vm1616_vm2, %v1933_v48 }
 0x8b1   :  { %3034 = vmatpush3.bf16.msra.mxu0 %v3882_v56  ;;  %3044 = vmatpush3.bf16.msra.mxu1 %v3838_v33 }
 0x8b2   :  { %3035 = vmatprep.subr.bf16.mxu0 %v3351_v32  ;;  %3045 = vmatprep.subr.bf16.mxu1 %v3351_v32 }
 0x8b3   :  { %3047 = vmatprep.mubr.msk.bf16.mxu1 %vm3352_vm0, %v3351_v32 }
 0x8b5   :  { %3036 = vmatpush3.bf16.msra.mxu0 %v3889_v57  ;;  %3046 = vmatpush3.bf16.msra.mxu1 %v3844_v34 }
 0x8b6   :  { %3037 = vmatprep.subr.bf16.mxu0 %v3351_v32  ;;  %3051 = vmatprep.subr.bf16.mxu1 %v3351_v32 }
 0x8b9   :  { %3038 = vmatpush3.bf16.msra.mxu0 %v3898_v59 }
 0x8ba   :  { %3063 = vmatprep.subr.bf16.mxu0 %v3351_v32 }
 0x96c   :  { %v2043_v49 = vpop.f32.mrf.mxu0 }
 0x96d   :  { %v2050_v50 = vrot.slane %v2043_v49, 2 }
 0x96e   :  { %v3029_v51 = vpop.f32.mrf.mxu0 }
 0x96f   :  { %v2052_v52 = vadd.f32 %v2050_v50, %v3863_v31 }
 0x970   :  { %v1971_v53 = vpop.f32.mrf.mxu1  ;;  %v2046_v54 = vpop.f32.mrf.mxu0 }
 0x971   :  { %3273 = vtanh.f32 %v2052_v52  ;;  %v1972_v58 = vadd.f32 %v3926_v3, %v1971_v53  ;;  %v2721_v2 = vmul.f32 -1.442695, %v2052_v52 }
 0x972   :  { %v3021_v60 = vpop.f32.mrf.mxu1  ;;  %v3030_v61 = vpop.f32.mrf.mxu0 }
 0x973   :  { %3275 = vtanh.f32 %v1972_v58  ;;  %v2719_v4 = vmul.f32 -1.442695, %v1972_v58 }
 0x974   :  { %v1974_v62 = vpop.f32.mrf.mxu1  ;;  %3277 = vpow2.f32 %v2721_v2 }
 0x975   :  { %3279 = vpow2.f32 %v2719_v4 }
 0x976   :  { %v3022_v63 = vpop.f32.mrf.mxu1 }
 0x97e   :  { %v3274_v0 = vpop.eup %3273 }
 0x97f   :  { %2065 = vrot.lane.b32.xlu0 %v3274_v0, %s3354_s3 }
 0x980   :  { %v3276_v1 = vpop.eup %3275 }
 0x981   :  { %1986 = vrot.lane.b32.xlu1 %v3276_v1, %s3354_s3  ;;  %v3278_v31 = vpop.eup %3277 }
 0x982   :  { %v3280_v5 = vpop.eup %3279  ;;  %v2056_v6 = vadd.f32 1.0, %v3278_v31 }
 0x983   :  { %v1980_v7 = vadd.f32 1.0, %v3280_v5 }
 0x984   :  { %3281 = vrcp.f32 %v2056_v6 }
 0x985   :  { %3283 = vrcp.f32 %v1980_v7 }
 0x991   :  { %v3282_v8 = vpop.eup %3281 }
 0x992   :  { %v3284_v11 = vpop.eup %3283  ;;  %v2063_v15 = vmul.f32 %v3282_v8, %v2061_v14 }
 0x993   :  { %v1984_v18 = vmul.f32 %v3284_v11, %v3975_v28 }
 0x9f1   :  { %v2066_v9 = vpop.permute.xlu0 %2065 }
 0x9f2   :  { %v2068_v10 = vmul.f32 %v3282_v8, %v2066_v9 }
 0x9f3   :  { %v1987_v12 = vpop.permute.xlu1 %1986 }
 0x9f4   :  { %2070 = vrot.lane.b32.xlu0 %v2068_v10, %s3355_s10  ;;  %v1989_v13 = vmul.f32 %v3284_v11, %v1987_v12 }
 0x9f6   :  { %1991 = vrot.lane.b32.xlu1 %v1989_v13, %s3355_s10 }
 0xa66   :  { %v2071_v16 = vpop.permute.xlu0 %2070 }
 0xa67   :  { %v4010_v17 = vadd.f32 %v2071_v16, %v2063_v15 }
 0xa68   :  { %v1992_v19 = vpop.permute.xlu1 %1991 }
 0xa69   :  { %3285 = vtanh.f32 %v4010_v17  ;;  %v4014_v20 = vadd.f32 %v1992_v19, %v1984_v18  ;;  %v2217_v4 = vrot.slane %v4010_v17, 6 }
 0xa6b   :  { %3287 = vtanh.f32 %v4014_v20 }
 0xa76   :  { %v3286_v21 = vpop.eup %3285 }
 0xa77   :  { %2076 = vrot.lane.b32.xlu0 %v3286_v21, %s3354_s3 }
 0xa78   :  { %v3288_v22 = vpop.eup %3287 }
 0xa79   :  { %1997 = vrot.lane.b32.xlu1 %v3288_v22, %s3354_s3 }
 0xae9   :  { %v2077_v23 = vpop.permute.xlu0 %2076 }
 0xaea   :  { %v2079_v24 = vmul.f32 %v3282_v8, %v2077_v23 }
 0xaeb   :  { %v1998_v26 = vpop.permute.xlu1 %1997 }
 0xaec   :  { %v2160_v25 = vpack.c.bf16 %v2079_v24, %v2079_v24  ;;  %2081 = vrot.lane.b32.xlu1 %v2079_v24, %s3355_s10  ;;  %v2000_v27 = vmul.f32 %v3284_v11, %v1998_v26 }
 0xaee   :  { %v2162_v28 = vrot.slane %v2160_v25, 3  ;;  %v2085_v29 = vrot.slane %v2000_v27, 2 }
 0xaf0   :  { %2163 = vrot.lane.b32.xlu1 %v2162_v28, %s3355_s10  ;;  %2086 = vrot.lane.b32.xlu0 %v2085_v29, %s3354_s3 }
 0xb5e   :  { %v2082_v30 = vpop.permute.xlu1 %2081 }
 0xb62   :  { %v2164_v35 = vpop.permute.xlu1 %2163  ;;  %v2087_v36 = vpop.permute.xlu0 %2086 }
 0xb63   :  { %3048 = vmatmul.mubr.msk.bf16.vlgmr.msra.gmra.mxu1 %vm1511_vm1, %v2164_v35  ;;  %v2089_v38 = vsel %vm1511_vm1, %v2082_v30, %v2087_v36 }
 0xb64   :  { %3052 = vmatpush3.bf16.msra.mxu1 %v3876_v55  ;;  %3059 = vmatprep.mubr.msk.bf16.mxu1 %vm3352_vm0, %v3351_v32  ;;  %v2090_v39 = vpack.c.bf16 %v2089_v38, %v2089_v38 }
 0xb65   :  { %3053 = vmatprep.subr.bf16.mxu1 %v3351_v32 }
 0xb66   :  { %v2092_v37 = vrot.slane %v2090_v39, 3 }
 0xb68   :  { %3054 = vmatpush3.bf16.msra.mxu1 %v3882_v56  ;;  %3040 = vmatmul.mubr.msk.bf16.vlgmr.msra.gmra.mxu0 %vm1616_vm2, %v2092_v37 }
 0xb69   :  { %3055 = vmatprep.subr.bf16.mxu1 %v3351_v32  ;;  %3064 = vmatpush3.bf16.msra.mxu0 %v3838_v33 }
 0xb6a   :  { %3067 = vmatprep.mubr.msk.bf16.mxu0 %vm3352_vm0, %v3351_v32  ;;  %3065 = vmatprep.subr.bf16.mxu0 %v3351_v32 }
 0xb6c   :  { %3056 = vmatpush3.bf16.msra.mxu1 %v3889_v57 }
 0xb6d   :  { %3057 = vmatprep.subr.bf16.mxu1 %v3351_v32  ;;  %3066 = vmatpush3.bf16.msra.mxu0 %v3844_v34 }
 0xb6e   :  { %3071 = vmatprep.subr.bf16.mxu0 %v3351_v32 }
 0xb70   :  { %3058 = vmatpush3.bf16.msra.mxu1 %v3898_v59 }
 0xb71   :  { %3083 = vmatprep.subr.bf16.mxu1 %v3351_v32 }
 0xc23   :  { %v2202_v40 = vpop.f32.mrf.mxu1 }
 0xc24   :  { %v2208_v33 = vadd.f32 %v2202_v40, %v3866_v42 }
 0xc25   :  { %v3049_v41 = vpop.f32.mrf.mxu1 }
 0xc26   :  { %3289 = vtanh.f32 %v2208_v33  ;;  %v2725_v51 = vmul.f32 -1.442695, %v2208_v33 }
 0xc27   :  { %v2205_v43 = vpop.f32.mrf.mxu1 }
 0xc28   :  { %v2130_v44 = vpop.f32.mrf.mxu0 }
 0xc29   :  { %v3050_v45 = vpop.f32.mrf.mxu1  ;;  %v2131_v46 = vadd.f32 %v3926_v3, %v2130_v44 }
 0xc2a   :  { %v3041_v47 = vpop.f32.mrf.mxu0 }
 0xc2b   :  { %3291 = vtanh.f32 %v2131_v46  ;;  %v2723_v52 = vmul.f32 -1.442695, %v2131_v46 }
 0xc2c   :  { %v2133_v48 = vpop.f32.mrf.mxu0  ;;  %3293 = vpow2.f32 %v2725_v51 }
 0xc2d   :  { %3295 = vpow2.f32 %v2723_v52 }
 0xc2e   :  { %v3042_v34 = vpop.f32.mrf.mxu0 }
 0xc33   :  { %v3290_v49 = vpop.eup %3289 }
 0xc34   :  { %2221 = vrot.lane.b32.xlu1 %v3290_v49, %s3354_s3 }
 0xc38   :  { %v3292_v50 = vpop.eup %3291 }
 0xc39   :  { %2145 = vrot.lane.b32.xlu0 %v3292_v50, %s3354_s3  ;;  %v3294_v53 = vpop.eup %3293 }
 0xc3a   :  { %v2212_v54 = vadd.f32 1.0, %v3294_v53  ;;  %v3296_v58 = vpop.eup %3295 }
 0xc3b   :  { %v2139_v60 = vadd.f32 1.0, %v3296_v58 }
 0xc3c   :  { %3297 = vrcp.f32 %v2212_v54 }
 0xc3d   :  { %3299 = vrcp.f32 %v2139_v60 }
 0xc49   :  { %v3298_v61 = vpop.eup %3297 }
 0xc4a   :  { %v3300_v0 = vpop.eup %3299  ;;  %v2219_v31 = vmul.f32 %v3298_v61, %v2217_v4 }
 0xc4b   :  { %v2143_v7 = vmul.f32 %v3300_v0, %v4014_v20 }
 0xca6   :  { %v2222_v62 = vpop.permute.xlu1 %2221 }
 0xca7   :  { %v2224_v63 = vmul.f32 %v3298_v61, %v2222_v62 }
 0xca9   :  { %2226 = vrot.lane.b32.xlu1 %v2224_v63, %s3355_s10 }
 0xcab   :  { %v2146_v1 = vpop.permute.xlu0 %2145 }
 0xcac   :  { %v2148_v2 = vmul.f32 %v3300_v0, %v2146_v1 }
 0xcae   :  { %2150 = vrot.lane.b32.xlu0 %v2148_v2, %s3355_s10 }
 0xd1b   :  { %v2227_v5 = vpop.permute.xlu1 %2226 }
 0xd1c   :  { %v4048_v6 = vadd.f32 %v2227_v5, %v2219_v31 }
 0xd1e   :  { %3301 = vtanh.f32 %v4048_v6  ;;  %v2372_v46 = vrot.slane %v4048_v6, 6 }
 0xd20   :  { %v2151_v8 = vpop.permute.xlu0 %2150 }
 0xd21   :  { %v4052_v9 = vadd.f32 %v2151_v8, %v2143_v7 }
 0xd23   :  { %3303 = vtanh.f32 %v4052_v9 }
 0xd2b   :  { %v3302_v10 = vpop.eup %3301 }
 0xd2c   :  { %2232 = vrot.lane.b32.xlu1 %v3302_v10, %s3354_s3 }
 0xd30   :  { %v3304_v11 = vpop.eup %3303 }
 0xd31   :  { %2156 = vrot.lane.b32.xlu0 %v3304_v11, %s3354_s3 }
 0xd9e   :  { %v2233_v12 = vpop.permute.xlu1 %2232 }
 0xd9f   :  { %v2235_v13 = vmul.f32 %v3298_v61, %v2233_v12 }
 0xda1   :  { %2237 = vrot.lane.b32.xlu0 %v2235_v13, %s3355_s10  ;;  %v2313_v14 = vpack.c.bf16 %v2235_v13, %v2235_v13 }
 0xda3   :  { %v2157_v15 = vpop.permute.xlu0 %2156 }
 0xda4   :  { %v2159_v16 = vmul.f32 %v3300_v0, %v2157_v15 }
 0xda5   :  { %2315 = vrot.lane.b32.xlu0 %v2313_v14, %s3355_s10 }
 0xda6   :  { %2241 = vrot.lane.b32.xlu1 %v2159_v16, %s3354_s3 }
 0xe13   :  { %v2238_v17 = vpop.permute.xlu0 %2237 }
 0xe17   :  { %v2316_v18 = vpop.permute.xlu0 %2315 }
 0xe18   :  { %3068 = vmatmul.mubr.msk.bf16.vlgmr.msra.gmra.mxu0 %vm1511_vm1, %v2316_v18  ;;  %v2242_v19 = vpop.permute.xlu1 %2241  ;;  %v3231_v18 = vld [vmem:[%s4113_s6 + $0x8] sm:$0xff]  }
 0xe19   :  { %3072 = vmatpush3.bf16.msra.mxu0 %v3876_v55  ;;  %3079 = vmatprep.mubr.msk.bf16.mxu0 %vm3352_vm0, %v3351_v32  ;;  %v2244_v20 = vsel %vm1511_vm1, %v2238_v17, %v2242_v19  ;;  %v3232_v19 = vld [vmem:[%s4113_s6] sm:$0xff]   ;;  %s2549_s6 = sshll.u32 %s3356_s25, 4  ;;  %s2550_s6 = int_to_ptr.vmem [resolvable:$true] %s2549_s6 }
 0xe1a   :  { %3073 = vmatprep.subr.bf16.mxu0 %v3351_v32  ;;  %v2245_v21 = vpack.c.bf16 %v2244_v20, %v2244_v20  ;;  %s3329_s26 = scalar_lea.vmem %s2550_s6, 32  ;;  %p3334_p1 = scmp.lt.s32.totalorder %s2550_s6, %s2550_s6 }
 0xe1b   :  { %p3330_p0 = scmp.ne.s32.totalorder %s2550_s6, %s3329_s26  ;;  %p3335_p2 = scmp.lt.s32.totalorder %s3329_s26, %s3329_s26 }
 0xe1c   :  { %3060 = vmatmul.mubr.msk.bf16.vlgmr.msra.gmra.mxu1 %vm1616_vm2, %v2245_v21 }
 0xe1d   :  { %3074 = vmatpush3.bf16.msra.mxu0 %v3882_v56  ;;  %3087 = vmatprep.mubr.msk.bf16.mxu1 %vm3352_vm0, %v3351_v32  ;;  %p3336_p3 = por %p3335_p2, %p3334_p1 }
 0xe1e   :  { %3075 = vmatprep.subr.bf16.mxu0 %v3351_v32  ;;  %3084 = vmatpush3.bf16.msra.mxu1 %v3231_v18 }
 0xe1f   :  { %3085 = vmatprep.subr.bf16.mxu1 %v3351_v32  ;;  %p3337_p4 = pnand %p3336_p3, %p3330_p0 }
 0xe21   :  { %3076 = vmatpush3.bf16.msra.mxu0 %v3889_v57 }
 0xe22   :  { %3077 = vmatprep.subr.bf16.mxu0 %v3351_v32  ;;  %3086 = vmatpush3.bf16.msra.mxu1 %v3232_v19 }
 0xe25   :  { %3078 = vmatpush3.bf16.msra.mxu0 %v3898_v59 }
 0xed8   :  { %v2354_v55 = vpop.f32.mrf.mxu0 }
 0xed9   :  { %v2361_v22 = vrot.slane %v2354_v55, 6 }
 0xeda   :  { %v3069_v23 = vpop.f32.mrf.mxu0 }
 0xedb   :  { %v2363_v24 = vadd.f32 %v2361_v22, %v3866_v42 }
 0xedc   :  { %v2357_v25 = vpop.f32.mrf.mxu0  ;;  %v2283_v26 = vpop.f32.mrf.mxu1 }
 0xedd   :  { %3305 = vtanh.f32 %v2363_v24  ;;  %v2284_v56 = vadd.f32 %v3926_v3, %v2283_v26  ;;  %v2729_v59 = vmul.f32 -1.442695, %v2363_v24  ;;  %v2732_v24 = vld [vmem:[%s4114_s7] ss:$0 sm:$0xff] }
 0xede   :  { %v3070_v27 = vpop.f32.mrf.mxu0  ;;  %v3061_v28 = vpop.f32.mrf.mxu1 }
 0xedf   :  { %3307 = vtanh.f32 %v2284_v56  ;;  %v2727_v36 = vmul.f32 -1.442695, %v2284_v56 }
 0xee0   :  { %v2286_v29 = vpop.f32.mrf.mxu1  ;;  %3309 = vpow2.f32 %v2729_v59 }
 0xee1   :  { %3311 = vpow2.f32 %v2727_v36 }
 0xee2   :  { %v3062_v30 = vpop.f32.mrf.mxu1 }
 0xeea   :  { %v3306_v57 = vpop.eup %3305 }
 0xeeb   :  { %2376 = vrot.lane.b32.xlu0 %v3306_v57, %s3354_s3 }
 0xeec   :  { %v3308_v35 = vpop.eup %3307 }
 0xeed   :  { %2298 = vrot.lane.b32.xlu1 %v3308_v35, %s3354_s3  ;;  %v3310_v42 = vpop.eup %3309 }
 0xeee   :  { %v3312_v38 = vpop.eup %3311  ;;  %v2367_v39 = vadd.f32 1.0, %v3310_v42 }
 0xeef   :  { %v2292_v37 = vadd.f32 1.0, %v3312_v38 }
 0xef0   :  { %3313 = vrcp.f32 %v2367_v39 }
 0xef1   :  { %3315 = vrcp.f32 %v2292_v37 }
 0xefd   :  { %v3314_v40 = vpop.eup %3313 }
 0xefe   :  { %v3316_v43 = vpop.eup %3315  ;;  %v2374_v47 = vmul.f32 %v3314_v40, %v2372_v46 }
 0xeff   :  { %v2296_v49 = vmul.f32 %v3316_v43, %v4052_v9 }
 0xf5d   :  { %v2377_v33 = vpop.permute.xlu0 %2376 }
 0xf5e   :  { %v2379_v41 = vmul.f32 %v3314_v40, %v2377_v33 }
 0xf5f   :  { %v2299_v44 = vpop.permute.xlu1 %2298 }
 0xf60   :  { %2381 = vrot.lane.b32.xlu0 %v2379_v41, %s3355_s10  ;;  %v2301_v45 = vmul.f32 %v3316_v43, %v2299_v44 }
 0xf62   :  { %2303 = vrot.lane.b32.xlu1 %v2301_v45, %s3355_s10 }
 0xfd2   :  { %v2382_v48 = vpop.permute.xlu0 %2381 }
 0xfd3   :  { %v2384_v34 = vadd.f32 %v2382_v48, %v2374_v47 }
 0xfd4   :  { %v2304_v50 = vpop.permute.xlu1 %2303 }
 0xfd5   :  { %3317 = vtanh.f32 %v2384_v34  ;;  %v2306_v51 = vadd.f32 %v2304_v50, %v2296_v49 }
 0xfd7   :  { %3319 = vtanh.f32 %v2306_v51 }
 0xfe2   :  { %v3318_v52 = vpop.eup %3317 }
 0xfe3   :  { %2387 = vrot.lane.b32.xlu0 %v3318_v52, %s3354_s3 }
 0xfe4   :  { %v3320_v53 = vpop.eup %3319 }
 0xfe5   :  { %2309 = vrot.lane.b32.xlu1 %v3320_v53, %s3354_s3 }
0x1055   :  { %v2388_v54 = vpop.permute.xlu0 %2387 }
0x1056   :  { %v2390_v58 = vmul.f32 %v3314_v40, %v2388_v54 }
0x1057   :  { %v2310_v60 = vpop.permute.xlu1 %2309 }
0x1058   :  { %2392 = vrot.lane.b32.xlu1 %v2390_v58, %s3355_s10  ;;  %v2312_v61 = vmul.f32 %v3316_v43, %v2310_v60 }
0x105a   :  { %v2396_v62 = vrot.slane %v2312_v61, 6 }
0x105c   :  { %2397 = vrot.lane.b32.xlu0 %v2396_v62, %s3354_s3 }
0x10ca   :  { %v2393_v63 = vpop.permute.xlu1 %2392 }
0x10ce   :  { %v2398_v0 = vpop.permute.xlu0 %2397 }
0x10cf   :  { %v2400_v1 = vsel %vm1511_vm1, %v2393_v63, %v2398_v0 }
0x10d0   :  { %v2401_v2 = vpack.c.bf16 %v2400_v1, %v2400_v1 }
0x10d2   :  { %v2403_v4 = vrot.slane %v2401_v2, 1 }
0x10d4   :  { %3080 = vmatmul.mubr.msk.bf16.vlgmr.msra.gmra.mxu0 %vm1616_vm2, %v2403_v4 }
0x1194   :  { %v2441_v31 = vpop.f32.mrf.mxu0 }
0x1195   :  { %v2442_v5 = vadd.f32 %v3926_v3, %v2441_v31 }
0x1196   :  { %v3081_v6 = vpop.f32.mrf.mxu0 }
0x1197   :  { %3321 = vtanh.f32 %v2442_v5  ;;  %v2731_v10 = vmul.f32 -1.442695, %v2442_v5 }
0x1198   :  { %v2444_v7 = vpop.f32.mrf.mxu0 }
0x1199   :  { %3323 = vpow2.f32 %v2731_v10 }
0x119a   :  { %v3082_v8 = vpop.f32.mrf.mxu0 }
0x11a4   :  { %v3322_v9 = vpop.eup %3321 }
0x11a5   :  { %2456 = vrot.lane.b32.xlu1 %v3322_v9, %s3354_s3 }
0x11a6   :  { %v3324_v11 = vpop.eup %3323 }
0x11a7   :  { %v2450_v12 = vadd.f32 1.0, %v3324_v11 }
0x11a9   :  { %3325 = vrcp.f32 %v2450_v12 }
0x11b6   :  { %v3326_v13 = vpop.eup %3325 }
0x11b7   :  { %v2454_v16 = vmul.f32 %v3326_v13, %v2306_v51 }
0x1217   :  { %v2457_v14 = vpop.permute.xlu1 %2456 }
0x1218   :  { %v2459_v15 = vmul.f32 %v3326_v13, %v2457_v14 }
0x121a   :  { %2461 = vrot.lane.b32.xlu0 %v2459_v15, %s3355_s10 }
0x128c   :  { %v2462_v17 = vpop.permute.xlu0 %2461 }
0x128d   :  { %v2464_v3 = vadd.f32 %v2462_v17, %v2454_v16 }
0x128f   :  { %3327 = vtanh.f32 %v2464_v3 }
0x129c   :  { %v3328_v20 = vpop.eup %3327 }
0x129d   :  { %2467 = vrot.lane.b32.xlu1 %v3328_v20, %s3354_s3 }
0x130f   :  { %v2468_v21 = vpop.permute.xlu1 %2467 }
0x1310   :  { %v2470_v55 = vmul.f32 %v3326_v13, %v2468_v21 }
0x1312   :  { %v2471_v22 = vpack.c.bf16 %v2470_v55, %v2470_v55 }
0x1314   :  { %2484 = vrot.lane.b32.xlu0 %v2471_v22, %s3355_s10 }
0x1386   :  { %v2485_v23 = vpop.permute.xlu0 %2484 }
0x1387   :  { %3088 = vmatmul.mubr.msk.bf16.vlgmr.msra.gmra.mxu1 %vm1511_vm1, %v2485_v23 }
0x1447   :  { %v2535_v25 = vpop.f32.mrf.mxu1 }
0x1448   :  { %v2536_v32 = vadd.f32 %v2732_v24, %v2535_v25 }
0x1449   :  { %v3089_v26 = vpop.f32.mrf.mxu1 }
0x144a   :  { %2542 = vst.msk [vmem:[#allocation2] sm:$0x3] %vm2541_vm3, %v2536_v32 }
0x144b   :  { %v2538_v56 = vpop.f32.mrf.mxu1 }
0x144c   :  { %3340 = shalt.err (!%p3337_p4)
}
0x144d   :  { %2552 = dma.vmem_to_hbm [thread:$0]  %s2550_s6, 32, %s4115_s8, [#allocation3]   ;;  %v3090_v27 = vpop.f32.mrf.mxu1 }
0x144e   :  { %3349 = dma.done.wait [#allocation3], 32  }
0x144f   :  { %3350 = vsyncadd [#allocation3], 4294967264 }
0x1450   :  { %2556 = vsyncpa [#allocation3], 1 }

</bundles_post_ra>
